<compile_context>
chip_gen: v7x
topology: tpu7x:2x2x1
jax: 0.10.0
libtpu: 0.0.40
codegen_flags: <defaults>
</compile_context>

<pallas_src>
import functools
import math

import jax
import jax.numpy as jnp
import numpy as np
from jax.experimental import pallas as pl
from jax.experimental.pallas import tpu as pltpu


# ----------------------------- Pallas kernel --------------------------------
def _double_conv_kernel(x9_ref, w1_ref, st1_ref, w2_ref, st2_ref, mask_ref,
                        o_ref, *, H, W, Hp, Wp):
    """Fused DoubleConv for one batch element, channels-major.

    x9_ref  : (1, 9*Cin, Hp*Wp) bf16  conv1 9-tap im2col on the padded grid
    w1_ref  : (Cmid, 9*Cin)     bf16  conv1 weights, K = tap-major x chan-minor
    st1_ref : (Cmid, 2)         f32   folded (scale, shift) of bias + BN1
    w2_ref  : (Cout, 9*Cmid)    bf16  conv2 weights, same K ordering
    st2_ref : (Cout, 2)         f32   folded (scale, shift) of bias + BN2
    mask_ref: (1, Hp*Wp)        f32   1.0 on interior of the padded grid
    o_ref   : (1, Cout, H*W)    bf16  dense, NCHW-ordered valid pixels
    """
    Cmid = w1_ref.shape[0]
    span = (H - 1) * Wp + W                 # top-left-indexed output columns

    # ---- conv1: single K-folded MXU matmul, evaluated at every padded-grid
    # position so h1 lands directly on conv2's zero-padded grid. ------------
    y1 = jnp.dot(w1_ref[...], x9_ref[0], preferred_element_type=jnp.float32)
    h1 = jnp.maximum(y1 * st1_ref[:, 0:1] + st1_ref[:, 1:2], 0.0)
    # Zero the 1-pixel border (this IS conv2's zero padding); cast bf16 once.
    h1 = (h1 * mask_ref[...]).astype(jnp.bfloat16)          # (Cmid, Hp*Wp)

    # ---- conv2: fold all 9 taps into the contraction dim (K = 9*Cmid). ----
    # Output column p = i*Wp + j; tap (di, dj) reads h1[:, p + di*Wp + dj],
    # i.e. a static lane-shifted slice (no roll, no wrap-around).
    taps = []
    for di in range(3):
        for dj in range(3):
            s = di * Wp + dj
            taps.append(h1[:, s:s + span])
    h9 = jnp.concatenate(taps, axis=0)                       # (9*Cmid, span)
    y2 = jnp.dot(w2_ref[...], h9, preferred_element_type=jnp.float32)
    y2 = jnp.maximum(y2 * st2_ref[:, 0:1] + st2_ref[:, 1:2], 0.0)
    y2 = y2.astype(o_ref.dtype)                              # cast once

    # ---- compact the stride-Wp rows into a lane-dense (Cout, H*W) slab so
    # the HBM writeback is dense and already NCHW-ordered. ------------------
    for i in range(H):
        o_ref[0, :, i * W:(i + 1) * W] = y2[:, i * Wp:i * Wp + W]


# ------------------------------- wrapper -------------------------------------
def _fold_bn(bias, gamma, beta, mean, var, eps):
    scale = gamma / jnp.sqrt(var + eps)
    shift = (bias - mean) * scale + beta
    return jnp.stack([scale, shift], axis=1).astype(jnp.float32)   # (C, 2)


def double_conv_forward(params, x_nchw, eps=1e-5):
    """Eval-mode DoubleConv forward.  NCHW in -> NCHW out (bf16)."""
    B, Cin, H, W = x_nchw.shape
    w1, w2 = params["w1"], params["w2"]
    Cmid, Cout = w1.shape[0], w2.shape[0]
    assert w1.shape[2:] == (3, 3) and w2.shape[2:] == (3, 3)

    Hp, Wp = H + 2, W + 2
    n = Hp * Wp

    # Channels-major, no transpose: pad by 2 so conv1 can be evaluated at every
    # position of the pad-1 grid, then build the 9-tap im2col wrapper-side
    # (the input is tiny).  x9[b, t*Cin+ci, h*Wp+w] = x_pad2[b, ci, h+di, w+dj].
    xp2 = jnp.pad(x_nchw.astype(jnp.float32), ((0, 0), (0, 0), (2, 2), (2, 2)))
    taps = [xp2[:, :, di:di + Hp, dj:dj + Wp]
            for di in range(3) for dj in range(3)]
    x9 = jnp.concatenate(taps, axis=1).reshape(B, 9 * Cin, n).astype(jnp.bfloat16)

    # 2-D bf16 weight slabs; K index = (di*3+dj)*C + c, matching x9 / h9.
    w1_2d = jnp.transpose(w1, (0, 2, 3, 1)).reshape(Cmid, 9 * Cin).astype(jnp.bfloat16)
    w2_2d = jnp.transpose(w2, (0, 2, 3, 1)).reshape(Cout, 9 * Cmid).astype(jnp.bfloat16)

    st1 = _fold_bn(params["b1"], params["bn1_g"], params["bn1_b"],
                   params["bn1_m"], params["bn1_v"], eps)           # (Cmid, 2)
    st2 = _fold_bn(params["b2"], params["bn2_g"], params["bn2_b"],
                   params["bn2_m"], params["bn2_v"], eps)           # (Cout, 2)

    # Interior mask of the padded grid: one (1, n) row == one small VMEM tile.
    r = np.arange(n) // Wp
    c = np.arange(n) % Wp
    mask = ((r >= 1) & (r <= H) & (c >= 1) & (c <= W)).astype(np.float32)
    mask = jnp.asarray(mask).reshape(1, n)

    out = pl.pallas_call(
        functools.partial(_double_conv_kernel, H=H, W=W, Hp=Hp, Wp=Wp),
        out_shape=jax.ShapeDtypeStruct((B, Cout, H * W), jnp.bfloat16),
        grid=(B,),
        in_specs=[
            pl.BlockSpec((1, 9 * Cin, n), lambda b: (b, 0, 0)),
            pl.BlockSpec((Cmid, 9 * Cin), lambda b: (0, 0)),
            pl.BlockSpec((Cmid, 2), lambda b: (0, 0)),
            pl.BlockSpec((Cout, 9 * Cmid), lambda b: (0, 0)),
            pl.BlockSpec((Cout, 2), lambda b: (0, 0)),
            pl.BlockSpec((1, n), lambda b: (0, 0)),
        ],
        out_specs=pl.BlockSpec((1, Cout, H * W), lambda b: (b, 0, 0)),
        compiler_params=pltpu.CompilerParams(
            dimension_semantics=("parallel",)),
    )(x9, w1_2d, st1, w2_2d, st2, mask)

    # (B, Cout, H*W) -> NCHW via a free reshape; no transpose, no slice.
    return out.reshape(B, Cout, H, W)


# --------------------------- pure-JAX reference ------------------------------
def _ref_conv_bn_relu(x_nchw, w_oihw, bias, gamma, beta, mean, var, eps=1e-5):
    y = jax.lax.conv_general_dilated(
        x_nchw.astype(jnp.bfloat16), w_oihw.astype(jnp.bfloat16),
        window_strides=(1, 1), padding=((1, 1), (1, 1)),
        dimension_numbers=("NCHW", "OIHW", "NCHW"),
        preferred_element_type=jnp.float32)
    z = y + bias[None, :, None, None]
    scale = (gamma / jnp.sqrt(var + eps))[None, :, None, None]
    return jnp.maximum((z - mean[None, :, None, None]) * scale
                       + beta[None, :, None, None], 0.0)


def _ref_double_conv(params, x_nchw):
    h = _ref_conv_bn_relu(x_nchw.astype(jnp.float32), params["w1"], params["b1"],
                          params["bn1_g"], params["bn1_b"],
                          params["bn1_m"], params["bn1_v"])
    return _ref_conv_bn_relu(h, params["w2"], params["b2"],
                             params["bn2_g"], params["bn2_b"],
                             params["bn2_m"], params["bn2_v"])


# ---------------------------------- main -------------------------------------
if __name__ == "__main__":
    key = jax.random.PRNGKey(0)
    ks = jax.random.split(key, 12)

    B, Cin, H, W = 2, 4, 16, 16
    Cout = 32

    def he(k, shape, fan_in):
        return jax.random.normal(k, shape, jnp.float32) * math.sqrt(2.0 / fan_in)

    params = {
        "w1": he(ks[0], (Cout, Cin, 3, 3), Cin * 9),
        "b1": 0.05 * jax.random.normal(ks[1], (Cout,), jnp.float32),
        "bn1_g": 1.0 + 0.1 * jax.random.normal(ks[2], (Cout,), jnp.float32),
        "bn1_b": 0.05 * jax.random.normal(ks[3], (Cout,), jnp.float32),
        "bn1_m": 0.1 * jax.random.normal(ks[4], (Cout,), jnp.float32),
        "bn1_v": jax.random.uniform(ks[5], (Cout,), jnp.float32, 0.5, 1.5),
        "w2": he(ks[6], (Cout, Cout, 3, 3), Cout * 9),
        "b2": 0.05 * jax.random.normal(ks[7], (Cout,), jnp.float32),
        "bn2_g": 1.0 + 0.1 * jax.random.normal(ks[8], (Cout,), jnp.float32),
        "bn2_b": 0.05 * jax.random.normal(ks[9], (Cout,), jnp.float32),
        "bn2_m": 0.1 * jax.random.normal(ks[10], (Cout,), jnp.float32),
        "bn2_v": jax.random.uniform(ks[11], (Cout,), jnp.float32, 0.5, 1.5),
    }

    x = jax.random.normal(jax.random.PRNGKey(1), (B, Cin, H, W), jnp.float32)

    out = jax.block_until_ready(double_conv_forward(params, x))
    assert out.shape == (B, Cout, H, W), out.shape
    assert bool(jnp.all(jnp.isfinite(out.astype(jnp.float32))))

    # Correctness vs. a plain-JAX (lax.conv) reference with the same bf16 MXU
    # operands; differences are f32 accumulation order + bf16 output rounding.
    ref = jax.block_until_ready(_ref_double_conv(params, x))
    np.testing.assert_allclose(np.asarray(out, dtype=np.float32),
                               np.asarray(ref), rtol=2e-2, atol=2e-2)

    print("KERNEL_OK")
</pallas_src>

<mosaic_0001>
module attributes {stable_mosaic.version = 11 : i64} {
  func.func @_double_conv_kernel(%arg0: i32, %arg1: memref<1x36x324xbf16, #tpu.memory_space<vmem>>, %arg2: memref<32x36xbf16, #tpu.memory_space<vmem>>, %arg3: memref<32x2xf32, #tpu.memory_space<vmem>>, %arg4: memref<32x288xbf16, #tpu.memory_space<vmem>>, %arg5: memref<32x2xf32, #tpu.memory_space<vmem>>, %arg6: memref<1x324xf32, #tpu.memory_space<vmem>>, %arg7: memref<1x32x256xbf16, #tpu.memory_space<vmem>>) attributes {dimension_semantics = [#tpu.dimension_semantics<parallel>], iteration_bounds = array<i64: 2>, scalar_prefetch = 0 : i64, scratch_operands = 0 : i64, tpu.core_type = #tpu.core_type<tc>, window_params = [{transform_indices = @transform_0, window_bounds = array<i64: 1, 36, 324>}, {pipeline_mode = #tpu.pipeline_mode<synchronous>, transform_indices = @transform_1, window_bounds = array<i64: 32, 36>}, {pipeline_mode = #tpu.pipeline_mode<synchronous>, transform_indices = @transform_2, window_bounds = array<i64: 32, 2>}, {pipeline_mode = #tpu.pipeline_mode<synchronous>, transform_indices = @transform_3, window_bounds = array<i64: 32, 288>}, {pipeline_mode = #tpu.pipeline_mode<synchronous>, transform_indices = @transform_4, window_bounds = array<i64: 32, 2>}, {pipeline_mode = #tpu.pipeline_mode<synchronous>, transform_indices = @transform_5, window_bounds = array<i64: 1, 324>}, {transform_indices = @transform_6, window_bounds = array<i64: 1, 32, 256>}]} {
    %c0 = arith.constant 0 : index
    %c0_0 = arith.constant 0 : index
    %0 = vector.load %arg2[%c0, %c0_0] : memref<32x36xbf16, #tpu.memory_space<vmem>>, vector<32x36xbf16>
    %c0_1 = arith.constant 0 : index
    %c0_2 = arith.constant 0 : index
    %c0_3 = arith.constant 0 : index
    %1 = vector.load %arg1[%c0_1, %c0_2, %c0_3] : memref<1x36x324xbf16, #tpu.memory_space<vmem>>, vector<1x36x324xbf16>
    %2 = vector.shape_cast %1 : vector<1x36x324xbf16> to vector<36x324xbf16>
    %cst = arith.constant dense<0.000000e+00> : vector<32x324xf32>
    %3 = tpu.matmul %0, %2, %cst {dimension_numbers = #tpu.dot_dimension_numbers<[1], [0], [0], [1], [0, 0, 1, 1], [], []>} : vector<32x36xbf16>, vector<36x324xbf16>, vector<32x324xf32> -> vector<32x324xf32>
    %c0_4 = arith.constant 0 : index
    %c0_5 = arith.constant 0 : index
    %4 = vector.load %arg3[%c0_4, %c0_5] : memref<32x2xf32, #tpu.memory_space<vmem>>, vector<32x1xf32>
    %5 = vector.broadcast %4 : vector<32x1xf32> to vector<32x324xf32>
    %6 = arith.mulf %3, %5 : vector<32x324xf32>
    %c0_6 = arith.constant 0 : index
    %c1 = arith.constant 1 : index
    %7 = vector.load %arg3[%c0_6, %c1] : memref<32x2xf32, #tpu.memory_space<vmem>>, vector<32x1xf32>
    %8 = vector.broadcast %7 : vector<32x1xf32> to vector<32x324xf32>
    %9 = arith.addf %6, %8 : vector<32x324xf32>
    %cst_7 = arith.constant 0.000000e+00 : f32
    %10 = vector.broadcast %cst_7 : f32 to vector<32x324xf32>
    %11 = arith.maximumf %9, %10 : vector<32x324xf32>
    %c0_8 = arith.constant 0 : index
    %c0_9 = arith.constant 0 : index
    %12 = vector.load %arg6[%c0_8, %c0_9] : memref<1x324xf32, #tpu.memory_space<vmem>>, vector<1x324xf32>
    %13 = vector.broadcast %12 : vector<1x324xf32> to vector<32x324xf32>
    %14 = arith.mulf %11, %13 : vector<32x324xf32>
    %15 = arith.truncf %14 : vector<32x324xf32> to vector<32x324xbf16>
    %16 = vector.extract_strided_slice %15 {offsets = [0, 0], sizes = [32, 286], strides = [1, 1]} : vector<32x324xbf16> to vector<32x286xbf16>
    %17 = vector.extract_strided_slice %15 {offsets = [0, 1], sizes = [32, 286], strides = [1, 1]} : vector<32x324xbf16> to vector<32x286xbf16>
    %18 = vector.extract_strided_slice %15 {offsets = [0, 2], sizes = [32, 286], strides = [1, 1]} : vector<32x324xbf16> to vector<32x286xbf16>
    %19 = vector.extract_strided_slice %15 {offsets = [0, 18], sizes = [32, 286], strides = [1, 1]} : vector<32x324xbf16> to vector<32x286xbf16>
    %20 = vector.extract_strided_slice %15 {offsets = [0, 19], sizes = [32, 286], strides = [1, 1]} : vector<32x324xbf16> to vector<32x286xbf16>
    %21 = vector.extract_strided_slice %15 {offsets = [0, 20], sizes = [32, 286], strides = [1, 1]} : vector<32x324xbf16> to vector<32x286xbf16>
    %22 = vector.extract_strided_slice %15 {offsets = [0, 36], sizes = [32, 286], strides = [1, 1]} : vector<32x324xbf16> to vector<32x286xbf16>
    %23 = vector.extract_strided_slice %15 {offsets = [0, 37], sizes = [32, 286], strides = [1, 1]} : vector<32x324xbf16> to vector<32x286xbf16>
    %24 = vector.extract_strided_slice %15 {offsets = [0, 38], sizes = [32, 286], strides = [1, 1]} : vector<32x324xbf16> to vector<32x286xbf16>
    %25 = tpu.concatenate %16, %17, %18, %19, %20, %21, %22, %23, %24 in 0 : vector<32x286xbf16>, vector<32x286xbf16>, vector<32x286xbf16>, vector<32x286xbf16>, vector<32x286xbf16>, vector<32x286xbf16>, vector<32x286xbf16>, vector<32x286xbf16>, vector<32x286xbf16> -> vector<288x286xbf16>
    %c0_10 = arith.constant 0 : index
    %c0_11 = arith.constant 0 : index
    %26 = vector.load %arg4[%c0_10, %c0_11] : memref<32x288xbf16, #tpu.memory_space<vmem>>, vector<32x288xbf16>
    %cst_12 = arith.constant dense<0.000000e+00> : vector<32x286xf32>
    %27 = tpu.matmul %26, %25, %cst_12 {dimension_numbers = #tpu.dot_dimension_numbers<[1], [0], [0], [1], [0, 0, 1, 1], [], []>} : vector<32x288xbf16>, vector<288x286xbf16>, vector<32x286xf32> -> vector<32x286xf32>
    %c0_13 = arith.constant 0 : index
    %c0_14 = arith.constant 0 : index
    %28 = vector.load %arg5[%c0_13, %c0_14] : memref<32x2xf32, #tpu.memory_space<vmem>>, vector<32x1xf32>
    %29 = vector.broadcast %28 : vector<32x1xf32> to vector<32x286xf32>
    %30 = arith.mulf %27, %29 : vector<32x286xf32>
    %c0_15 = arith.constant 0 : index
    %c1_16 = arith.constant 1 : index
    %31 = vector.load %arg5[%c0_15, %c1_16] : memref<32x2xf32, #tpu.memory_space<vmem>>, vector<32x1xf32>
    %32 = vector.broadcast %31 : vector<32x1xf32> to vector<32x286xf32>
    %33 = arith.addf %30, %32 : vector<32x286xf32>
    %cst_17 = arith.constant 0.000000e+00 : f32
    %34 = vector.broadcast %cst_17 : f32 to vector<32x286xf32>
    %35 = arith.maximumf %33, %34 : vector<32x286xf32>
    %36 = arith.truncf %35 : vector<32x286xf32> to vector<32x286xbf16>
    %37 = vector.extract_strided_slice %36 {offsets = [0, 0], sizes = [32, 16], strides = [1, 1]} : vector<32x286xbf16> to vector<32x16xbf16>
    %c0_18 = arith.constant 0 : index
    %c0_19 = arith.constant 0 : index
    %c0_20 = arith.constant 0 : index
    %38 = vector.load %arg7[%c0_18, %c0_19, %c0_20] : memref<1x32x256xbf16, #tpu.memory_space<vmem>>, vector<1x32x16xbf16>
    %39 = vector.shape_cast %38 : vector<1x32x16xbf16> to vector<32x16xbf16>
    %40 = vector.shape_cast %37 : vector<32x16xbf16> to vector<1x32x16xbf16>
    tpu.vector_store %arg7[%c0_18, %c0_19, %c0_20], %40 {strides = array<i32>} : memref<1x32x256xbf16, #tpu.memory_space<vmem>>, vector<1x32x16xbf16>,
    %41 = vector.extract_strided_slice %36 {offsets = [0, 18], sizes = [32, 16], strides = [1, 1]} : vector<32x286xbf16> to vector<32x16xbf16>
    %c0_21 = arith.constant 0 : index
    %c0_22 = arith.constant 0 : index
    %c16 = arith.constant 16 : index
    %42 = vector.load %arg7[%c0_21, %c0_22, %c16] : memref<1x32x256xbf16, #tpu.memory_space<vmem>>, vector<1x32x16xbf16>
    %43 = vector.shape_cast %42 : vector<1x32x16xbf16> to vector<32x16xbf16>
    %44 = vector.shape_cast %41 : vector<32x16xbf16> to vector<1x32x16xbf16>
    tpu.vector_store %arg7[%c0_21, %c0_22, %c16], %44 {strides = array<i32>} : memref<1x32x256xbf16, #tpu.memory_space<vmem>>, vector<1x32x16xbf16>,
    %45 = vector.extract_strided_slice %36 {offsets = [0, 36], sizes = [32, 16], strides = [1, 1]} : vector<32x286xbf16> to vector<32x16xbf16>
    %c0_23 = arith.constant 0 : index
    %c0_24 = arith.constant 0 : index
    %c32 = arith.constant 32 : index
    %46 = vector.load %arg7[%c0_23, %c0_24, %c32] : memref<1x32x256xbf16, #tpu.memory_space<vmem>>, vector<1x32x16xbf16>
    %47 = vector.shape_cast %46 : vector<1x32x16xbf16> to vector<32x16xbf16>
    %48 = vector.shape_cast %45 : vector<32x16xbf16> to vector<1x32x16xbf16>
    tpu.vector_store %arg7[%c0_23, %c0_24, %c32], %48 {strides = array<i32>} : memref<1x32x256xbf16, #tpu.memory_space<vmem>>, vector<1x32x16xbf16>,
    %49 = vector.extract_strided_slice %36 {offsets = [0, 54], sizes = [32, 16], strides = [1, 1]} : vector<32x286xbf16> to vector<32x16xbf16>
    %c0_25 = arith.constant 0 : index
    %c0_26 = arith.constant 0 : index
    %c48 = arith.constant 48 : index
    %50 = vector.load %arg7[%c0_25, %c0_26, %c48] : memref<1x32x256xbf16, #tpu.memory_space<vmem>>, vector<1x32x16xbf16>
    %51 = vector.shape_cast %50 : vector<1x32x16xbf16> to vector<32x16xbf16>
    %52 = vector.shape_cast %49 : vector<32x16xbf16> to vector<1x32x16xbf16>
    tpu.vector_store %arg7[%c0_25, %c0_26, %c48], %52 {strides = array<i32>} : memref<1x32x256xbf16, #tpu.memory_space<vmem>>, vector<1x32x16xbf16>,
    %53 = vector.extract_strided_slice %36 {offsets = [0, 72], sizes = [32, 16], strides = [1, 1]} : vector<32x286xbf16> to vector<32x16xbf16>
    %c0_27 = arith.constant 0 : index
    %c0_28 = arith.constant 0 : index
    %c64 = arith.constant 64 : index
    %54 = vector.load %arg7[%c0_27, %c0_28, %c64] : memref<1x32x256xbf16, #tpu.memory_space<vmem>>, vector<1x32x16xbf16>
    %55 = vector.shape_cast %54 : vector<1x32x16xbf16> to vector<32x16xbf16>
    %56 = vector.shape_cast %53 : vector<32x16xbf16> to vector<1x32x16xbf16>
    tpu.vector_store %arg7[%c0_27, %c0_28, %c64], %56 {strides = array<i32>} : memref<1x32x256xbf16, #tpu.memory_space<vmem>>, vector<1x32x16xbf16>,
    %57 = vector.extract_strided_slice %36 {offsets = [0, 90], sizes = [32, 16], strides = [1, 1]} : vector<32x286xbf16> to vector<32x16xbf16>
    %c0_29 = arith.constant 0 : index
    %c0_30 = arith.constant 0 : index
    %c80 = arith.constant 80 : index
    %58 = vector.load %arg7[%c0_29, %c0_30, %c80] : memref<1x32x256xbf16, #tpu.memory_space<vmem>>, vector<1x32x16xbf16>
    %59 = vector.shape_cast %58 : vector<1x32x16xbf16> to vector<32x16xbf16>
    %60 = vector.shape_cast %57 : vector<32x16xbf16> to vector<1x32x16xbf16>
    tpu.vector_store %arg7[%c0_29, %c0_30, %c80], %60 {strides = array<i32>} : memref<1x32x256xbf16, #tpu.memory_space<vmem>>, vector<1x32x16xbf16>,
    %61 = vector.extract_strided_slice %36 {offsets = [0, 108], sizes = [32, 16], strides = [1, 1]} : vector<32x286xbf16> to vector<32x16xbf16>
    %c0_31 = arith.constant 0 : index
    %c0_32 = arith.constant 0 : index
    %c96 = arith.constant 96 : index
    %62 = vector.load %arg7[%c0_31, %c0_32, %c96] : memref<1x32x256xbf16, #tpu.memory_space<vmem>>, vector<1x32x16xbf16>
    %63 = vector.shape_cast %62 : vector<1x32x16xbf16> to vector<32x16xbf16>
    %64 = vector.shape_cast %61 : vector<32x16xbf16> to vector<1x32x16xbf16>
    tpu.vector_store %arg7[%c0_31, %c0_32, %c96], %64 {strides = array<i32>} : memref<1x32x256xbf16, #tpu.memory_space<vmem>>, vector<1x32x16xbf16>,
    %65 = vector.extract_strided_slice %36 {offsets = [0, 126], sizes = [32, 16], strides = [1, 1]} : vector<32x286xbf16> to vector<32x16xbf16>
    %c0_33 = arith.constant 0 : index
    %c0_34 = arith.constant 0 : index
    %c112 = arith.constant 112 : index
    %66 = vector.load %arg7[%c0_33, %c0_34, %c112] : memref<1x32x256xbf16, #tpu.memory_space<vmem>>, vector<1x32x16xbf16>
    %67 = vector.shape_cast %66 : vector<1x32x16xbf16> to vector<32x16xbf16>
    %68 = vector.shape_cast %65 : vector<32x16xbf16> to vector<1x32x16xbf16>
    tpu.vector_store %arg7[%c0_33, %c0_34, %c112], %68 {strides = array<i32>} : memref<1x32x256xbf16, #tpu.memory_space<vmem>>, vector<1x32x16xbf16>,
    %69 = vector.extract_strided_slice %36 {offsets = [0, 144], sizes = [32, 16], strides = [1, 1]} : vector<32x286xbf16> to vector<32x16xbf16>
    %c0_35 = arith.constant 0 : index
    %c0_36 = arith.constant 0 : index
    %c128 = arith.constant 128 : index
    %70 = vector.load %arg7[%c0_35, %c0_36, %c128] : memref<1x32x256xbf16, #tpu.memory_space<vmem>>, vector<1x32x16xbf16>
    %71 = vector.shape_cast %70 : vector<1x32x16xbf16> to vector<32x16xbf16>
    %72 = vector.shape_cast %69 : vector<32x16xbf16> to vector<1x32x16xbf16>
    tpu.vector_store %arg7[%c0_35, %c0_36, %c128], %72 {strides = array<i32>} : memref<1x32x256xbf16, #tpu.memory_space<vmem>>, vector<1x32x16xbf16>,
    %73 = vector.extract_strided_slice %36 {offsets = [0, 162], sizes = [32, 16], strides = [1, 1]} : vector<32x286xbf16> to vector<32x16xbf16>
    %c0_37 = arith.constant 0 : index
    %c0_38 = arith.constant 0 : index
    %c144 = arith.constant 144 : index
    %74 = vector.load %arg7[%c0_37, %c0_38, %c144] : memref<1x32x256xbf16, #tpu.memory_space<vmem>>, vector<1x32x16xbf16>
    %75 = vector.shape_cast %74 : vector<1x32x16xbf16> to vector<32x16xbf16>
    %76 = vector.shape_cast %73 : vector<32x16xbf16> to vector<1x32x16xbf16>
    tpu.vector_store %arg7[%c0_37, %c0_38, %c144], %76 {strides = array<i32>} : memref<1x32x256xbf16, #tpu.memory_space<vmem>>, vector<1x32x16xbf16>,
    %77 = vector.extract_strided_slice %36 {offsets = [0, 180], sizes = [32, 16], strides = [1, 1]} : vector<32x286xbf16> to vector<32x16xbf16>
    %c0_39 = arith.constant 0 : index
    %c0_40 = arith.constant 0 : index
    %c160 = arith.constant 160 : index
    %78 = vector.load %arg7[%c0_39, %c0_40, %c160] : memref<1x32x256xbf16, #tpu.memory_space<vmem>>, vector<1x32x16xbf16>
    %79 = vector.shape_cast %78 : vector<1x32x16xbf16> to vector<32x16xbf16>
    %80 = vector.shape_cast %77 : vector<32x16xbf16> to vector<1x32x16xbf16>
    tpu.vector_store %arg7[%c0_39, %c0_40, %c160], %80 {strides = array<i32>} : memref<1x32x256xbf16, #tpu.memory_space<vmem>>, vector<1x32x16xbf16>,
    %81 = vector.extract_strided_slice %36 {offsets = [0, 198], sizes = [32, 16], strides = [1, 1]} : vector<32x286xbf16> to vector<32x16xbf16>
    %c0_41 = arith.constant 0 : index
    %c0_42 = arith.constant 0 : index
    %c176 = arith.constant 176 : index
    %82 = vector.load %arg7[%c0_41, %c0_42, %c176] : memref<1x32x256xbf16, #tpu.memory_space<vmem>>, vector<1x32x16xbf16>
    %83 = vector.shape_cast %82 : vector<1x32x16xbf16> to vector<32x16xbf16>
    %84 = vector.shape_cast %81 : vector<32x16xbf16> to vector<1x32x16xbf16>
    tpu.vector_store %arg7[%c0_41, %c0_42, %c176], %84 {strides = array<i32>} : memref<1x32x256xbf16, #tpu.memory_space<vmem>>, vector<1x32x16xbf16>,
    %85 = vector.extract_strided_slice %36 {offsets = [0, 216], sizes = [32, 16], strides = [1, 1]} : vector<32x286xbf16> to vector<32x16xbf16>
    %c0_43 = arith.constant 0 : index
    %c0_44 = arith.constant 0 : index
    %c192 = arith.constant 192 : index
    %86 = vector.load %arg7[%c0_43, %c0_44, %c192] : memref<1x32x256xbf16, #tpu.memory_space<vmem>>, vector<1x32x16xbf16>
    %87 = vector.shape_cast %86 : vector<1x32x16xbf16> to vector<32x16xbf16>
    %88 = vector.shape_cast %85 : vector<32x16xbf16> to vector<1x32x16xbf16>
    tpu.vector_store %arg7[%c0_43, %c0_44, %c192], %88 {strides = array<i32>} : memref<1x32x256xbf16, #tpu.memory_space<vmem>>, vector<1x32x16xbf16>,
    %89 = vector.extract_strided_slice %36 {offsets = [0, 234], sizes = [32, 16], strides = [1, 1]} : vector<32x286xbf16> to vector<32x16xbf16>
    %c0_45 = arith.constant 0 : index
    %c0_46 = arith.constant 0 : index
    %c208 = arith.constant 208 : index
    %90 = vector.load %arg7[%c0_45, %c0_46, %c208] : memref<1x32x256xbf16, #tpu.memory_space<vmem>>, vector<1x32x16xbf16>
    %91 = vector.shape_cast %90 : vector<1x32x16xbf16> to vector<32x16xbf16>
    %92 = vector.shape_cast %89 : vector<32x16xbf16> to vector<1x32x16xbf16>
    tpu.vector_store %arg7[%c0_45, %c0_46, %c208], %92 {strides = array<i32>} : memref<1x32x256xbf16, #tpu.memory_space<vmem>>, vector<1x32x16xbf16>,
    %93 = vector.extract_strided_slice %36 {offsets = [0, 252], sizes = [32, 16], strides = [1, 1]} : vector<32x286xbf16> to vector<32x16xbf16>
    %c0_47 = arith.constant 0 : index
    %c0_48 = arith.constant 0 : index
    %c224 = arith.constant 224 : index
    %94 = vector.load %arg7[%c0_47, %c0_48, %c224] : memref<1x32x256xbf16, #tpu.memory_space<vmem>>, vector<1x32x16xbf16>
    %95 = vector.shape_cast %94 : vector<1x32x16xbf16> to vector<32x16xbf16>
    %96 = vector.shape_cast %93 : vector<32x16xbf16> to vector<1x32x16xbf16>
    tpu.vector_store %arg7[%c0_47, %c0_48, %c224], %96 {strides = array<i32>} : memref<1x32x256xbf16, #tpu.memory_space<vmem>>, vector<1x32x16xbf16>,
    %97 = vector.extract_strided_slice %36 {offsets = [0, 270], sizes = [32, 16], strides = [1, 1]} : vector<32x286xbf16> to vector<32x16xbf16>
    %c0_49 = arith.constant 0 : index
    %c0_50 = arith.constant 0 : index
    %c240 = arith.constant 240 : index
    %98 = vector.load %arg7[%c0_49, %c0_50, %c240] : memref<1x32x256xbf16, #tpu.memory_space<vmem>>, vector<1x32x16xbf16>
    %99 = vector.shape_cast %98 : vector<1x32x16xbf16> to vector<32x16xbf16>
    %100 = vector.shape_cast %97 : vector<32x16xbf16> to vector<1x32x16xbf16>
    tpu.vector_store %arg7[%c0_49, %c0_50, %c240], %100 {strides = array<i32>} : memref<1x32x256xbf16, #tpu.memory_space<vmem>>, vector<1x32x16xbf16>,
    return
  }
  func.func @transform_0(%arg0: i32) -> (i32, i32, i32) {
    %c0_i32 = arith.constant 0 : i32
    %c0_i32_0 = arith.constant 0 : i32
    %c0_i32_1 = arith.constant 0 : i32
    return %arg0, %c0_i32, %c0_i32_0 : i32, i32, i32
  }
  func.func @transform_1(%arg0: i32) -> (i32, i32) {
    %c0_i32 = arith.constant 0 : i32
    %c0_i32_0 = arith.constant 0 : i32
    %c0_i32_1 = arith.constant 0 : i32
    return %c0_i32, %c0_i32_0 : i32, i32
  }
  func.func @transform_2(%arg0: i32) -> (i32, i32) {
    %c0_i32 = arith.constant 0 : i32
    %c0_i32_0 = arith.constant 0 : i32
    %c0_i32_1 = arith.constant 0 : i32
    return %c0_i32, %c0_i32_0 : i32, i32
  }
  func.func @transform_3(%arg0: i32) -> (i32, i32) {
    %c0_i32 = arith.constant 0 : i32
    %c0_i32_0 = arith.constant 0 : i32
    %c0_i32_1 = arith.constant 0 : i32
    return %c0_i32, %c0_i32_0 : i32, i32
  }
  func.func @transform_4(%arg0: i32) -> (i32, i32) {
    %c0_i32 = arith.constant 0 : i32
    %c0_i32_0 = arith.constant 0 : i32
    %c0_i32_1 = arith.constant 0 : i32
    return %c0_i32, %c0_i32_0 : i32, i32
  }
  func.func @transform_5(%arg0: i32) -> (i32, i32) {
    %c0_i32 = arith.constant 0 : i32
    %c0_i32_0 = arith.constant 0 : i32
    %c0_i32_1 = arith.constant 0 : i32
    return %c0_i32, %c0_i32_0 : i32, i32
  }
  func.func @transform_6(%arg0: i32) -> (i32, i32, i32) {
    %c0_i32 = arith.constant 0 : i32
    %c0_i32_0 = arith.constant 0 : i32
    %c0_i32_1 = arith.constant 0 : i32
    return %arg0, %c0_i32, %c0_i32_0 : i32, i32, i32
  }
}

</mosaic_0001>

<bundles_post_ra>
// kernel: tpu_custom_call.1
= control target key start
LH: loop header
LB: loop body
LE: loop exit
PB: predicated region body
PF: predicated region fallthrough
CT: control target
= control target key end

     0   :  { %11 = vsyncpa [#allocation3], 0  ;;  %s2525_s0 = inlined_call_operand.vmem [shape: bf16[2,36,324], index: 0, kind: input, shape index: {}]   ;;  %s2526_s1 = inlined_call_operand.vmem [shape: bf16[32,36], index: 1, kind: input, shape index: {}]   ;;  %s2527_s2 = inlined_call_operand.vmem [shape: f32[32,2], index: 2, kind: input, shape index: {}]   ;;  %s2528_s3 = inlined_call_operand.vmem [shape: bf16[32,288], index: 3, kind: input, shape index: {}]   ;;  %s2529_s4 = inlined_call_operand.vmem [shape: f32[32,2], index: 4, kind: input, shape index: {}]   ;;  %s2530_s5 = inlined_call_operand.vmem [shape: f32[1,324], index: 5, kind: input, shape index: {}]   ;;  %s2531_s6 = inlined_call_operand.hbm [shape: bf16[2,32,256], index: 6, kind: output, shape index: {}]  }
   0x1   :  { %13 = vsyncpa [#allocation3 + $0x1], 0  ;;  %s1814_s21 = smov 0   ;;  %s1816_s22 = smov 0  }
   0x2   :  { %s1818_s23 = smov 0   ;;  %s1820_s24 = smov 0  }
   0x3 LB: > { %s1835_s25 = sadd.s32 4294967295, %s1752_s24   ;;  %s1454_s26 = sadd.s32 4294967294, %s1752_s24   ;;  %s1752_s24 = sphi %s1820_s24, %s2548_s24   ;;  %s1748_s23 = sphi %s1818_s23, %s2547_s23   ;;  %s1744_s22 = sphi %s1816_s22, %s2546_s22   ;;  %s1740_s21 = sphi %s1814_s21, %s2545_s21  }
   0x4   : > { %s1839_s27 = sadd.s32 1, %s1752_s24   ;;  %s157_s28 = sadd.s32 1, %s1748_s23 }
   0x5   : > { %s154_s29 = ssub.s32 %s1752_s24, %s1839_s27  ;;  %p167_p0 = scmp.ne.s32.totalorder %s1748_s23, %s1744_s22 }
   0x6   : > { %p155_p1 = scmp.eq.s32.totalorder %s154_s29, 0  ;;  %p168_p2 = scmp.eq.s32.totalorder %s1835_s25, 1 }
   0x7   : > { %p173_p3 = scmp.ne.s32.totalorder %s1744_s22, %s1740_s21  ;;  %p174_p4 = scmp.eq.s32.totalorder %s1454_s26, 1 }
   0x8   : > { %s1850_s30 = scalar_select %p155_p1, %s1748_s23, %s157_s28  }
   0x9   : > { %p1852_p5 = por %p168_p2, %p167_p0  ;;  %p1856_p6 = por %p174_p4, %p173_p3 }
   0xa   : > { %p1457_p7 = scmp.ge.s32.totalorder %s1752_s24, 1  ;;  %p215_p8 = scmp.lt.s32.totalorder %s1752_s24, 3 }
   0xc   : > { %p216_p9 = pnand %p1457_p7, %p215_p8 }
   0xd   : > { %p245_p10 = scmp.lt.s32.totalorder (!%p216_p9), %s1835_s25, 1  ;;  %v1680_v0 = vld [vmem:[%s2526_s1] sm:$0xff] (!%p216_p9)   ;;  %v1754_v1 = vmov (!%p216_p9), 0   ;;  %vm315_vm0 = vcmask (!%p216_p9), 293888   ;;  %v1755_v3 = vmov (!%p216_p9), 1   ;;  %v435_v4 = vld [vmem:[%s2527_s2 + $0x8] sm:$0xff] (!%p216_p9)  ;;  %v512_v24 = vlaneseq (!%p216_p9) }
   0xe   : > { %219 = sbr.rel (%p216_p9) target bundleno = 944 (0x3b0), region = 44  ;;  %364 = vmatprep.mubr.bf16.mxu0 (!%p216_p9), %v1754_v1  ;;  %1660 = vset.pattern.permute.xlu0 (!%p216_p9), %v1754_v1  ;;  %v434_v2 = vld [vmem:[%s2527_s2] sm:$0xff] (!%p216_p9)  ;;  %v436_v6 = vld [vmem:[%s2527_s2 + $0x10] sm:$0xff] (!%p216_p9)  ;;  %v437_v9 = vld [vmem:[%s2527_s2 + $0x18] sm:$0xff] (!%p216_p9)  ;;  %vm322_vm1 = vcmask (!%p216_p9), 1041408   ;;  %s1756_s13 = smov (!%p216_p9), 90  }
   0xf   : > { %1575 = vmatprep.mubr.msk.bf16.mxu1 (!%p216_p9), %vm315_vm0, %v1680_v0  ;;  %440 = vperm.xlu0 (!%p216_p9), %1660, %v434_v2   ;;  %v1681_v19 = vld [vmem:[%s2526_s1 + $0x8] sm:$0xff] (!%p216_p9)   ;;  %v513_v26 = vshrl.u32 (!%p216_p9), %v512_v24, 7  ;;  %v510_v29 = vld [vmem:[%s2530_s5] sm:$0x7] (!%p216_p9)  ;;  %s1757_s14 = smov (!%p216_p9), 127   ;;  %s1758_s15 = smov (!%p216_p9), 109  }
  0x10   : > { %1661 = vset.pattern.permute.xlu1 (!%p216_p9), %v1755_v3  ;;  %s1760_s17 = smov (!%p216_p9), 110   ;;  %s1761_s18 = smov (!%p216_p9), 108   ;;  %vm563_vm2 = vcmask (!%p216_p9), 1039360   ;;  %vm724_vm3 = vcmask (!%p216_p9), 736256   ;;  %vm586_vm4 = vcmask (!%p216_p9), 1031168   ;;  %vm609_vm5 = vcmask (!%p216_p9), 900096  }
  0x11   : > { %471 = vperm.xlu1 (!%p216_p9), %1661, %v434_v2   ;;  %v514_v28 = vsub.s32 (!%p216_p9), 0, %v513_v26  ;;  %v518_v30 = vsub.s32 (!%p216_p9), 1, %v513_v26  ;;  %v522_v31 = vsub.s32 (!%p216_p9), 2, %v513_v26  ;;  %s1763_s28 = smov (!%p216_p9), 91   ;;  %vm773_vm6 = vcmask (!%p216_p9), 261120   ;;  %s1764_s20 = smov (!%p216_p9), 112  }
  0x12   : > { %vm632_vm7 = vcmask (!%p216_p9), 891904   ;;  %vm655_vm8 = vcmask (!%p216_p9), 883712   ;;  %vm678_vm9 = vcmask (!%p216_p9), 752640   ;;  %vm701_vm10 = vcmask (!%p216_p9), 744448   ;;  %s1765_s26 = smov (!%p216_p9), 124   ;;  %s1767_s29 = smov (!%p216_p9), 120  }
  0x13   : > { %445 = vperm.xlu0 (!%p216_p9), %1660, %v435_v4   ;;  %v1906_v37 = vrot.slane (!%p216_p9), %v510_v29, %v514_v28  ;;  %v1908_v42 = vrot.slane (!%p216_p9), %v510_v29, %v518_v30  ;;  %v523_v44 = vrot.slane (!%p216_p9), %v510_v29, %v522_v31  ;;  %vm1080_vm11 = vcmask (!%p216_p9), 125952   ;;  %s1768_s9 = smov (!%p216_p9), 106   ;;  %s1769_s10 = smov (!%p216_p9), 118  }
  0x14   : > { %s2535_s12 = smov (!%p216_p9), 116   ;;  %vm1097_vm12 = vcmask (!%p216_p9), 257152   ;;  %vm1114_vm13 = vcmask (!%p216_p9), 388352   ;;  %vm1131_vm14 = vcmask (!%p216_p9), 519552   ;;  %vm1148_vm15 = vcmask (!%p216_p9), 650752  }
  0x15   : > { %s246_s11 = scalar_select %p245_p10, %s1835_s25, 1  ;;  %475 = vperm.xlu1 %1661, %v435_v4  }
  0x17   : > { %s1596_s16 = smul.u32 60, %s246_s11  ;;  %450 = vperm.xlu0 %1660, %v436_v6   ;;  %s1770_s11 = smov 100  }
  0x19   : > { %s249_s19 = scalar_lea.vmem %s2525_s0, %s1596_s16  ;;  %1662 = vset.pattern.permute.xlu1 %v1754_v1  ;;  %s2533_s16 = smov 126  }
  0x1a   : > { %v1669_v5 = vld [vmem:[%s249_s19 + $0x4] ss:$12 sps:$4 sm:$0xff]   ;;  %v1671_v7 = vld [vmem:[%s249_s19 + $0x8] ss:$12 sps:$4 sm:$0xff]   ;;  %v1672_v8 = vld [vmem:[%s249_s19] ss:$12 sps:$4 sm:$0xff]   ;;  %455 = vperm.xlu1 %1662, %v437_v9  }
  0x1b   : > { %332 = vmatprep.subr.bf16.mxu0 %v1669_v5  ;;  %1569 = vmatprep.subr.bf16.mxu1 %v1671_v7  ;;  %v1673_v10 = vld [vmem:[%s249_s19 + $0x1c] ss:$12 sps:$4 sm:$0xff]   ;;  %v1675_v11 = vld [vmem:[%s249_s19 + $0x20] ss:$12 sps:$4 sm:$0xff]   ;;  %v1676_v12 = vld [vmem:[%s249_s19 + $0x18] ss:$12 sps:$4 sm:$0xff]  }
  0x1c   : > { %333 = vmatpush1.bf16.msra.mxu0 %v1672_v8  ;;  %1570 = vmatpush3.bf16.msra.mxu1 %v1671_v7  ;;  %v263_v13 = vld [vmem:[%s249_s19 + $0x30] sm:$0x33]  ;;  %v1678_v15 = vld [vmem:[%s249_s19 + $0x38] ss:$0 sps:$4 sm:$0x33]   ;;  %s1762_s19 = smov 92  }
  0x1d   : > { %334 = vmatprep.subr.bf16.mxu0 %v1673_v10  ;;  %v1469_v14 = vcombine.high %v263_v13, %v263_v13  ;;  %v1468_v16 = vcombine.low %v263_v13, %v263_v13  ;;  %1571 = vmatprep.subr.bf16.mxu1 %v1675_v11  ;;  %v330_v18 = vsel %vm322_vm1, %v1678_v15, 0 }
  0x1e   : > { %1663 = vset.pattern.permute.xlu0 %v1755_v3  ;;  %1664 = vset.pattern.permute.xlu1 %v1755_v3 }
  0x1f   : > { %v324_v17 = vsel %vm322_vm1, %v1468_v16, 0  ;;  %479 = vperm.xlu0 %1663, %v436_v6   ;;  %483 = vperm.xlu1 %1664, %v437_v9  }
  0x20   : > { %335 = vmatpush1.bf16.msra.mxu0 %v1676_v12  ;;  %1572 = vmatpush3.bf16.msra.mxu1 %v1675_v11 }
  0x21   : > { %1471 = vmatprep.subr.msk.bf16.mxu0 %vm322_vm1, %v1469_v14  ;;  %1595 = vmatprep.subr.msk.bf16.mxu1 %vm322_vm1, %v1678_v15  ;;  %vm1182_vm1 = vcmask 913152  }
  0x23   : > { %1665 = vset.pattern.permute.xlu1 %v1754_v1  ;;  %1666 = vset.pattern.permute.xlu0 %v1754_v1 }
  0x24   : > { %337 = vmatpush1.bf16.msra.mxu0 %v324_v17  ;;  %1574 = vmatpush3.bf16.msra.mxu1 %v330_v18 }
  0x27   : > { %1472 = vmatmul.mubr.msk.bf16.vlgmr.msra.gmra.mrb[0].mxu0 %vm315_vm0, %v1680_v0  ;;  %1576 = vmatmul.mubr.msk.bf16.vlgmr.msra.gmra.mrb[0].mxu1 %vm315_vm0, %v1681_v19 }
  0x28   : > { %374 = vmatprep.mubr.bf16.mxu0 %v1754_v1  ;;  %865 = vmatprep.mubr.bf16.mxu1 %v1754_v1 }
  0x2f   : > { %1473 = vmatmul.mubr.msk.bf16.gmra.mrb[4].mxu0 %vm315_vm0, %v1681_v19  ;;  %vm1165_vm0 = vcmask 781952  }
  0x8e   : > { %v441_v20 = vpop.permute.xlu0 %440 }
  0x90   : > { %v472_v21 = vpop.permute.xlu1 %471 }
  0x92   : > { %v446_v22 = vpop.permute.xlu0 %445 }
  0x94   : > { %v476_v23 = vpop.permute.xlu1 %475 }
  0x96   : > { %v451_v27 = vpop.permute.xlu0 %450 }
  0x99   : > { %v1899_v25 = vpop.permute.xlu1 %455 }
  0x9e   : > { %v480_v32 = vpop.permute.xlu0 %479  ;;  %v1904_v33 = vpop.permute.xlu1 %483 }
  0xfa   : > { %v366_v34 = vpop.f32.mrb[0].mxu0  ;;  %v1577_v35 = vpop.f32.mrb[0].mxu1 }
  0xfb   : > { %v458_v36 = vmul.f32 %v441_v20, %v366_v34  ;;  %v466_v38 = vmul.f32 %v1577_v35, %v451_v27  ;;  %v368_v39 = vpop.f32.mrb[1].mxu0  ;;  %v419_v40 = vpop.f32.mrb[1].mxu1 }
  0xfc   : > { %v459_v41 = vmul.f32 %v441_v20, %v368_v39  ;;  %v460_v43 = vmul.f32 %v441_v20, %v419_v40  ;;  %v370_v45 = vpop.f32.mrb[2].mxu0  ;;  %v1578_v46 = vpop.f32.mrb[2].mxu1 }
  0xfd   : > { %v486_v47 = vadd.f32 %v472_v21, %v458_v36  ;;  %v494_v48 = vadd.f32 %v480_v32, %v466_v38  ;;  %v461_v49 = vmul.f32 %v446_v22, %v370_v45  ;;  %v469_v50 = vmul.f32 %v1578_v46, %v1899_v25  ;;  %v372_v51 = vpop.f32.mrb[3].mxu0  ;;  %v422_v52 = vpop.f32.mrb[3].mxu1  ;;  %v987_v45 = vld [vmem:[%s2529_s4 + $0x18] sm:$0xff] }
  0xfe   : > { %v487_v53 = vadd.f32 %v472_v21, %v459_v41  ;;  %v488_v54 = vadd.f32 %v472_v21, %v460_v43  ;;  %v462_v55 = vmul.f32 %v446_v22, %v372_v51  ;;  %v463_v56 = vmul.f32 %v446_v22, %v422_v52  ;;  %v985_v43 = vld [vmem:[%s2529_s4 + $0x8] sm:$0xff] }
  0xff   : > { %v498_v57 = vmax.f32 %v486_v47, 0.0  ;;  %v506_v58 = vmax.f32 %v494_v48, 0.0  ;;  %v489_v59 = vadd.f32 %v476_v23, %v461_v49  ;;  %v497_v60 = vadd.f32 %v1904_v33, %v469_v50 }
 0x100   : > { %v499_v61 = vmax.f32 %v487_v53, 0.0  ;;  %v500_v62 = vmax.f32 %v488_v54, 0.0  ;;  %v490_v63 = vadd.f32 %v476_v23, %v462_v55  ;;  %v491_v0 = vadd.f32 %v476_v23, %v463_v56 }
 0x101   : > { %v501_v2 = vmax.f32 %v489_v59, 0.0  ;;  %v509_v4 = vmax.f32 %v497_v60, 0.0  ;;  %v527_v5 = vmul.f32 %v1906_v37, %v498_v57  ;;  %v535_v6 = vmul.f32 %v523_v44, %v506_v58 }
 0x102   : > { %v502_v7 = vmax.f32 %v490_v63, 0.0  ;;  %v503_v8 = vmax.f32 %v491_v0, 0.0  ;;  %v376_v9 = vpop.f32.mrb[4].mxu0  ;;  %v528_v10 = vmul.f32 %v1908_v42, %v499_v61  ;;  %v529_v15 = vmul.f32 %v523_v44, %v500_v62 }
 0x103   : > { %v530_v11 = vmul.f32 %v1906_v37, %v501_v2  ;;  %v538_v12 = vmul.f32 %v523_v44, %v509_v4  ;;  %v464_v13 = vmul.f32 %v451_v27, %v376_v9  ;;  %v378_v14 = vpop.f32.mrb[5].mxu0 }
 0x104   : > { %v531_v16 = vmul.f32 %v1908_v42, %v502_v7  ;;  %v532_v17 = vmul.f32 %v523_v44, %v503_v8  ;;  %v465_v18 = vmul.f32 %v451_v27, %v378_v14  ;;  %v380_v19 = vpop.f32.mrb[6].mxu0  ;;  %v986_v44 = vld [vmem:[%s2529_s4 + $0x10] sm:$0xff] }
 0x105   : > { %v1916_v20 = vpack.c.bf16 %v530_v11, %v527_v5  ;;  %v1918_v21 = vpack.c.bf16 %v538_v12, %v535_v6  ;;  %v492_v22 = vadd.f32 %v480_v32, %v464_v13  ;;  %v467_v23 = vmul.f32 %v1899_v25, %v380_v19  ;;  %v382_v24 = vpop.f32.mrb[7].mxu0 }
 0x106   : > { %v1921_v26 = vpack.c.bf16 %v531_v16, %v528_v10  ;;  %v1923_v28 = vpack.c.bf16 %v532_v17, %v529_v15  ;;  %v493_v29 = vadd.f32 %v480_v32, %v465_v18  ;;  %v468_v30 = vmul.f32 %v1899_v25, %v382_v24 }
 0x107   : > { %v504_v31 = vmax.f32 %v492_v22, 0.0  ;;  %v495_v34 = vadd.f32 %v1904_v33, %v467_v23  ;;  %712 = vrot.lane.b32.xlu0 %v1916_v20, %s1756_s13  ;;  %551 = vrot.lane.b32.xlu1 %v1916_v20, %s1757_s14 }
 0x108   : > { %v505_v27 = vmax.f32 %v493_v29, 0.0  ;;  %v496_v35 = vadd.f32 %v1904_v33, %v468_v30  ;;  %780 = vmatprep.subr.bf16.mxu0 %v1921_v26  ;;  %v2064_v29 = vld [vmem:[%s2528_s3 + $0x8] ss:$12 sps:$4 sm:$0xff]  }
 0x109   : > { %v507_v36 = vmax.f32 %v495_v34, 0.0  ;;  %781 = vmatpush1.bf16.msra.mxu0 %v1916_v20  ;;  %v533_v32 = vmul.f32 %v1906_v37, %v504_v31 }
 0x10a   : > { %v508_v25 = vmax.f32 %v496_v35, 0.0  ;;  %v534_v39 = vmul.f32 %v1908_v42, %v505_v27 }
 0x10b   : > { %v536_v38 = vmul.f32 %v1906_v37, %v507_v36  ;;  %620 = vrot.lane.b32.xlu0 %v1916_v20, %s1758_s15  ;;  %561 = vrot.lane.b32.xlu1 %v1918_v21, %s1757_s14  ;;  %v2001_v37 = vld [vmem:[%s2528_s3 + $0x4] ss:$12 sps:$4 sm:$0xff]  }
 0x10c   : > { %v537_v33 = vmul.f32 %v1908_v42, %v508_v25  ;;  %812 = vmatprep.mubr.bf16.mxu0 %v2001_v37  ;;  %v984_v42 = vld [vmem:[%s2529_s4] sm:$0xff] }
 0x10d   : > { %v542_v40 = vpack.c.bf16 %v536_v38, %v533_v32  ;;  %v2082_v38 = vld [vmem:[%s2528_s3 + $0x20] ss:$12 sps:$4 sm:$0xff]  }
 0x10e   : > { %v543_v41 = vpack.c.bf16 %v537_v33, %v534_v39 }
 0x10f   : > { %555 = vrot.lane.b32.xlu0 %v1923_v28, %s1757_s14  ;;  %574 = vrot.lane.b32.xlu1 %v1916_v20, %s2533_s16 }
 0x110   : > { %782 = vmatprep.subr.bf16.mxu0 %v543_v41 }
 0x111   : > { %783 = vmatpush1.bf16.msra.mxu0 %v542_v40 }
 0x113   : > { %578 = vrot.lane.b32.xlu0 %v1923_v28, %s2533_s16  ;;  %584 = vrot.lane.b32.xlu1 %v1918_v21, %s2533_s16 }
 0x117   : > { %722 = vrot.lane.b32.xlu1 %v1918_v21, %s1756_s13  ;;  %714 = vrot.lane.b32.xlu0 %v1921_v26, %s1756_s13 }
 0x11b   : > { %597 = vrot.lane.b32.xlu1 %v1916_v20, %s1760_s17  ;;  %599 = vrot.lane.b32.xlu0 %v1921_v26, %s1760_s17 }
 0x11f   : > { %607 = vrot.lane.b32.xlu1 %v1918_v21, %s1760_s17  ;;  %624 = vrot.lane.b32.xlu0 %v1923_v28, %s1758_s15 }
 0x123   : > { %630 = vrot.lane.b32.xlu1 %v1918_v21, %s1758_s15  ;;  %622 = vrot.lane.b32.xlu0 %v1921_v26, %s1758_s15 }
 0x127   : > { %553 = vrot.lane.b32.xlu1 %v1921_v26, %s1757_s14  ;;  %557 = vrot.lane.b32.xlu0 %v542_v40, %s1757_s14 }
 0x12b   : > { %576 = vrot.lane.b32.xlu1 %v1921_v26, %s2533_s16  ;;  %718 = vrot.lane.b32.xlu0 %v542_v40, %s1756_s13 }
 0x12f   : > { %716 = vrot.lane.b32.xlu1 %v1923_v28, %s1756_s13  ;;  %559 = vrot.lane.b32.xlu0 %v543_v41, %s1757_s14  ;;  %s2532_s14 = sand.u32 1, %s1744_s22  }
 0x133   : > { %601 = vrot.lane.b32.xlu1 %v1923_v28, %s1760_s17  ;;  %647 = vrot.lane.b32.xlu0 %v1923_v28, %s1761_s18 }
 0x137   : > { %580 = vrot.lane.b32.xlu1 %v542_v40, %s2533_s16  ;;  %582 = vrot.lane.b32.xlu0 %v543_v41, %s2533_s16 }
 0x13b   : > { %603 = vrot.lane.b32.xlu1 %v542_v40, %s1760_s17  ;;  %720 = vrot.lane.b32.xlu0 %v543_v41, %s1756_s13  ;;  %s1772_s13 = smov 114  }
 0x13f   : > { %626 = vrot.lane.b32.xlu1 %v542_v40, %s1758_s15  ;;  %605 = vrot.lane.b32.xlu0 %v543_v41, %s1760_s17 }
 0x143   : > { %653 = vrot.lane.b32.xlu1 %v1918_v21, %s1761_s18  ;;  %645 = vrot.lane.b32.xlu0 %v1921_v26, %s1761_s18 }
 0x147   : > { %649 = vrot.lane.b32.xlu1 %v542_v40, %s1761_s18  ;;  %643 = vrot.lane.b32.xlu0 %v1916_v20, %s1761_s18 }
 0x14b   : > { %628 = vrot.lane.b32.xlu1 %v543_v41, %s1758_s15  ;;  %670 = vrot.lane.b32.xlu0 %v1923_v28, %s1762_s19  ;;  %s1458_s15 = sshll.u32 %s2532_s14, 5  ;;  %s1774_s14 = smov 102  }
 0x14f   : > { %676 = vrot.lane.b32.xlu1 %v1918_v21, %s1762_s19  ;;  %668 = vrot.lane.b32.xlu0 %v1921_v26, %s1762_s19 }
 0x153   : > { %651 = vrot.lane.b32.xlu1 %v543_v41, %s1761_s18  ;;  %666 = vrot.lane.b32.xlu0 %v1916_v20, %s1762_s19 }
 0x157   : > { %672 = vrot.lane.b32.xlu1 %v542_v40, %s1762_s19  ;;  %693 = vrot.lane.b32.xlu0 %v1923_v28, %s1763_s28 }
 0x15b   : > { %674 = vrot.lane.b32.xlu1 %v543_v41, %s1762_s19  ;;  %691 = vrot.lane.b32.xlu0 %v1921_v26, %s1763_s28  ;;  %s2176_s19 = scalar_lea.vmem [#allocation2], %s1458_s15  ;;  %s1773_s15 = smov 104  }
 0x15f   : > { %699 = vrot.lane.b32.xlu1 %v1918_v21, %s1763_s28  ;;  %689 = vrot.lane.b32.xlu0 %v1916_v20, %s1763_s28 }
 0x163   : > { %697 = vrot.lane.b32.xlu1 %v543_v41, %s1763_s28  ;;  %695 = vrot.lane.b32.xlu0 %v542_v40, %s1763_s28  ;;  %s1766_s28 = smov 122  }
 0x167   : > { %990 = vperm.xlu1 %1665, %v984_v42   ;;  %995 = vperm.xlu0 %1666, %v985_v43  }
 0x16b   : > { %1000 = vperm.xlu1 %1665, %v986_v44   ;;  %1667 = vset.pattern.permute.xlu0 %v1755_v3 }
 0x16c   : > { %1021 = vperm.xlu0 %1667, %v984_v42  }
 0x16f   : > { %1005 = vperm.xlu1 %1665, %v987_v45  }
 0x170   : > { %1033 = vperm.xlu0 %1667, %v987_v45  }
 0x173   : > { %1668 = vset.pattern.permute.xlu1 %v1755_v3 }
 0x174   : > { %1025 = vperm.xlu1 %1668, %v985_v43  }
 0x178   : > { %1029 = vperm.xlu1 %1668, %v986_v44  }
 0x179   : > { %v713_v46 = vpop.permute.xlu0 %712  ;;  %v552_v47 = vpop.permute.xlu1 %551 }
 0x17d   : > { %v2022_v48 = vpop.permute.xlu0 %620  ;;  %v2024_v49 = vpop.permute.xlu1 %561 }
 0x181   : > { %v2026_v50 = vpop.permute.xlu0 %555  ;;  %v575_v51 = vpop.permute.xlu1 %574 }
 0x185   : > { %v2028_v52 = vpop.permute.xlu0 %578  ;;  %v2030_v53 = vpop.permute.xlu1 %584 }
 0x189   : > { %v2032_v54 = vpop.permute.xlu1 %722  ;;  %v715_v55 = vpop.permute.xlu0 %714 }
 0x18a   : > { %v725_v10 = vsel %vm724_vm3, %v713_v46, %v715_v55 }
 0x18d   : > { %v598_v56 = vpop.permute.xlu1 %597  ;;  %v600_v3 = vpop.permute.xlu0 %599 }
 0x18e   : > { %v610_v26 = vsel %vm609_vm5, %v598_v56, %v600_v3 }
 0x191   : > { %v2034_v57 = vpop.permute.xlu1 %607  ;;  %v625_v58 = vpop.permute.xlu0 %624 }
 0x195   : > { %v2036_v59 = vpop.permute.xlu1 %630  ;;  %v2038_v60 = vpop.permute.xlu0 %622 }
 0x196   : > { %v634_v35 = vsel %vm632_vm7, %v2038_v60, %v625_v58  ;;  %v633_v32 = vsel %vm632_vm7, %v2022_v48, %v2038_v60 }
 0x199   : > { %v554_v61 = vpop.permute.xlu1 %553  ;;  %v558_v62 = vpop.permute.xlu0 %557 }
 0x19a   : > { %v565_v63 = vsel %vm563_vm2, %v554_v61, %v2026_v50  ;;  %v564_v0 = vsel %vm563_vm2, %v552_v47, %v554_v61  ;;  %v1684_v61 = vld [vmem:[%s2528_s3] ss:$12 sps:$4 sm:$0xff]  }
 0x19b   : > { %784 = vmatprep.subr.bf16.mxu0 %v565_v63 }
 0x19c   : > { %785 = vmatpush1.bf16.msra.mxu0 %v564_v0  ;;  %v1687_v0 = vld [vmem:[%s2528_s3 + $0x1c] ss:$12 sps:$4 sm:$0xff]  }
 0x19d   : > { %v577_v2 = vpop.permute.xlu1 %576  ;;  %v719_v4 = vpop.permute.xlu0 %718 }
 0x19e   : > { %v588_v11 = vsel %vm586_vm4, %v577_v2, %v2028_v52  ;;  %v587_v14 = vsel %vm586_vm4, %v575_v51, %v577_v2 }
 0x1a1   : > { %v2041_v5 = vpop.permute.xlu1 %716  ;;  %v560_v6 = vpop.permute.xlu0 %559 }
 0x1a2   : > { %v566_v7 = vsel %vm563_vm2, %v558_v62, %v560_v6  ;;  %v567_v8 = vsel %vm563_vm2, %v560_v6, %v2024_v49  ;;  %v726_v9 = vsel %vm724_vm3, %v715_v55, %v2041_v5  ;;  %vm1209_vm2 = vcmask 932864  }
 0x1a3   : > { %786 = vmatprep.subr.bf16.mxu0 %v567_v8  ;;  %833 = vmatprep.subr.bf16.mxu1 %v726_v9 }
 0x1a4   : > { %787 = vmatpush1.bf16.msra.mxu0 %v566_v7  ;;  %834 = vmatpush1.bf16.msra.mxu1 %v725_v10 }
 0x1a5   : > { %v2049_v12 = vpop.permute.xlu1 %601  ;;  %v648_v13 = vpop.permute.xlu0 %647  ;;  %788 = vmatprep.subr.bf16.mxu0 %v588_v11 }
 0x1a6   : > { %v611_v19 = vsel %vm609_vm5, %v600_v3, %v2049_v12 }
 0x1a8   : > { %789 = vmatpush1.bf16.msra.mxu0 %v587_v14 }
 0x1a9   : > { %v581_v15 = vpop.permute.xlu1 %580  ;;  %v583_v16 = vpop.permute.xlu0 %582 }
 0x1aa   : > { %v589_v17 = vsel %vm586_vm4, %v581_v15, %v583_v16  ;;  %v590_v18 = vsel %vm586_vm4, %v583_v16, %v2030_v53  ;;  %vm1345_vm4 = vcmask 818176  }
 0x1ab   : > { %790 = vmatprep.subr.bf16.mxu0 %v590_v18 }
 0x1ac   : > { %791 = vmatpush1.bf16.msra.mxu0 %v589_v17 }
 0x1ad   : > { %v604_v20 = vpop.permute.xlu1 %603  ;;  %v721_v22 = vpop.permute.xlu0 %720  ;;  %792 = vmatprep.subr.bf16.mxu0 %v611_v19 }
 0x1ae   : > { %v727_v23 = vsel %vm724_vm3, %v719_v4, %v721_v22  ;;  %v728_v24 = vsel %vm724_vm3, %v721_v22, %v2032_v54  ;;  %vm1218_vm3 = vcmask 1044352  }
 0x1af   : > { %835 = vmatprep.subr.bf16.mxu1 %v728_v24 }
 0x1b0   : > { %793 = vmatpush1.bf16.msra.mxu0 %v610_v26  ;;  %836 = vmatpush1.bf16.msra.mxu1 %v727_v23 }
 0x1b1   : > { %v627_v30 = vpop.permute.xlu1 %626  ;;  %1537 = vmatprep.subr.bf16.mxu1 %v625_v58  ;;  %v606_v31 = vpop.permute.xlu0 %605 }
 0x1b2   : > { %v612_v34 = vsel %vm609_vm5, %v604_v20, %v606_v31  ;;  %v613_v27 = vsel %vm609_vm5, %v606_v31, %v2034_v57 }
 0x1b3   : > { %794 = vmatprep.subr.bf16.mxu0 %v613_v27  ;;  %1482 = vmatmul.mubr.msk.bf16.vlgmr.msra.gmra.mrb[4].mxu1 %vm773_vm6, %v2064_v29 }
 0x1b4   : > { %795 = vmatpush1.bf16.msra.mxu0 %v612_v34  ;;  %1538 = vmatpush3.bf16.msra.mxu1 %v1923_v28 }
 0x1b5   : > { %v654_v36 = vpop.permute.xlu1 %653  ;;  %1539 = vmatprep.subr.bf16.mxu1 %v2036_v59  ;;  %v646_v25 = vpop.permute.xlu0 %645  ;;  %796 = vmatprep.subr.bf16.mxu0 %v634_v35 }
 0x1b6   : > { %875 = vmatprep.mubr.bf16.mxu1 %v1754_v1 }
 0x1b8   : > { %797 = vmatpush1.bf16.msra.mxu0 %v633_v32  ;;  %1540 = vmatpush3.bf16.msra.mxu1 %v1918_v21  ;;  %v657_v21 = vsel %vm655_vm8, %v646_v25, %v648_v13 }
 0x1b9   : > { %v650_v28 = vpop.permute.xlu1 %649  ;;  %1541 = vmatprep.subr.bf16.mxu1 %v648_v13  ;;  %v644_v39 = vpop.permute.xlu0 %643 }
 0x1bb   : > { %1483 = vmatmul.mubr.msk.bf16.gmra.mrb[8].mxu1 %vm773_vm6, %v2082_v38 }
 0x1bc   : > { %1542 = vmatpush3.bf16.msra.mxu1 %v2026_v50  ;;  %918 = vmatprep.mubr.bf16.mxu1 %v2001_v37  ;;  %v656_v37 = vsel %vm655_vm8, %v644_v39, %v646_v25 }
 0x1bd   : > { %v629_v1 = vpop.permute.xlu1 %628  ;;  %1543 = vmatprep.subr.bf16.mxu1 %v654_v36  ;;  %v671_v33 = vpop.permute.xlu0 %670 }
 0x1be   : > { %v635_v40 = vsel %vm632_vm7, %v627_v30, %v629_v1  ;;  %v636_v41 = vsel %vm632_vm7, %v629_v1, %v2036_v59 }
 0x1bf   : > { %798 = vmatprep.subr.bf16.mxu0 %v636_v41 }
 0x1c0   : > { %799 = vmatpush1.bf16.msra.mxu0 %v635_v40  ;;  %1544 = vmatpush3.bf16.msra.mxu1 %v2024_v49 }
 0x1c1   : > { %v677_v42 = vpop.permute.xlu1 %676  ;;  %1545 = vmatprep.subr.bf16.mxu1 %v671_v33  ;;  %v669_v43 = vpop.permute.xlu0 %668  ;;  %800 = vmatprep.subr.bf16.mxu0 %v657_v21 }
 0x1c2   : > { %v680_v48 = vsel %vm678_vm9, %v669_v43, %v671_v33 }
 0x1c4   : > { %801 = vmatpush1.bf16.msra.mxu0 %v656_v37  ;;  %1546 = vmatpush3.bf16.msra.mxu1 %v2028_v52 }
 0x1c5   : > { %v652_v44 = vpop.permute.xlu1 %651  ;;  %1547 = vmatprep.subr.bf16.mxu1 %v677_v42  ;;  %v667_v45 = vpop.permute.xlu0 %666 }
 0x1c6   : > { %v658_v46 = vsel %vm655_vm8, %v650_v28, %v652_v44  ;;  %v659_v47 = vsel %vm655_vm8, %v652_v44, %v654_v36  ;;  %v679_v51 = vsel %vm678_vm9, %v667_v45, %v669_v43 }
 0x1c7   : > { %802 = vmatprep.subr.bf16.mxu0 %v659_v47 }
 0x1c8   : > { %803 = vmatpush1.bf16.msra.mxu0 %v658_v46  ;;  %1548 = vmatpush3.bf16.msra.mxu1 %v2030_v53 }
 0x1c9   : > { %v673_v49 = vpop.permute.xlu1 %672  ;;  %v694_v50 = vpop.permute.xlu0 %693  ;;  %804 = vmatprep.subr.bf16.mxu0 %v680_v48 }
 0x1ca   : > { %1549 = vmatprep.subr.bf16.mxu1 %v694_v50 }
 0x1cc   : > { %805 = vmatpush1.bf16.msra.mxu0 %v679_v51  ;;  %1550 = vmatpush3.bf16.msra.mxu1 %v2049_v12 }
 0x1cd   : > { %v675_v52 = vpop.permute.xlu1 %674  ;;  %v692_v55 = vpop.permute.xlu0 %691 }
 0x1ce   : > { %v681_v56 = vsel %vm678_vm9, %v673_v49, %v675_v52  ;;  %v682_v3 = vsel %vm678_vm9, %v675_v52, %v677_v42  ;;  %v703_v53 = vsel %vm701_vm10, %v692_v55, %v694_v50 }
 0x1cf   : > { %806 = vmatprep.subr.bf16.mxu0 %v682_v3 }
 0x1d0   : > { %807 = vmatpush1.bf16.msra.mxu0 %v681_v56 }
 0x1d1   : > { %v700_v58 = vpop.permute.xlu1 %699  ;;  %v690_v59 = vpop.permute.xlu0 %689  ;;  %808 = vmatprep.subr.bf16.mxu0 %v703_v53 }
 0x1d2   : > { %v702_v60 = vsel %vm701_vm10, %v690_v59, %v692_v55  ;;  %1551 = vmatprep.subr.bf16.mxu1 %v700_v58 }
 0x1d3   : > { %1552 = vmatpush3.bf16.msra.mxu1 %v2034_v57  ;;  %v1689_v57 = vld [vmem:[%s2528_s3 + $0x18] ss:$12 sps:$4 sm:$0xff]  }
 0x1d4   : > { %809 = vmatpush1.bf16.msra.mxu0 %v702_v60  ;;  %1579 = vmatprep.subr.bf16.mxu1 %v2041_v5 }
 0x1d5   : > { %v698_v62 = vpop.permute.xlu1 %697  ;;  %v696_v63 = vpop.permute.xlu0 %695 }
 0x1d6   : > { %v704_v2 = vsel %vm701_vm10, %v696_v63, %v698_v62  ;;  %919 = vmatmul.mubr.bf16.vlgmr.msra.gmra.mrb[12].mxu1 %v1684_v61  ;;  %v705_v4 = vsel %vm701_vm10, %v698_v62, %v700_v58 }
 0x1d7   : > { %810 = vmatprep.subr.bf16.mxu0 %v705_v4  ;;  %1580 = vmatpush3.bf16.msra.mxu1 %v2041_v5 }
 0x1d8   : > { %811 = vmatpush1.bf16.msra.mxu0 %v704_v2  ;;  %1581 = vmatprep.subr.bf16.mxu1 %v2032_v54 }
 0x1d9   : > { %926 = vmatprep.mubr.bf16.mxu1 %v1687_v0 }
 0x1db   : > { %813 = vmatmul.mubr.bf16.vlgmr.msra.gmra.mrb[8].mxu0 %v1684_v61  ;;  %1582 = vmatpush3.bf16.msra.mxu1 %v2032_v54 }
 0x1dc   : > { %822 = vmatprep.mubr.bf16.mxu0 %v1687_v0 }
 0x1de   : > { %927 = vmatmul.mubr.bf16.gmra.mrb[16].mxu1 %v1689_v57 }
 0x1df   : > { %1583 = vmatprep.mubr.msk.bf16.mxu1 %vm773_vm6, %v2064_v29 }
 0x1e3   : > { %823 = vmatmul.mubr.bf16.gmra.mrb[12].mxu0 %v1689_v57 }
 0x1e6   : > { %1584 = vmatmul.mubr.msk.bf16.vlgmr.msra.gmra.mrb[20].mxu1 %vm773_vm6, %v2082_v38  ;;  %v2126_v13 = vpop.permute.xlu1 %990  ;;  %v2130_v15 = vpop.permute.xlu0 %995 }
 0x1ea   : > { %v2128_v54 = vpop.permute.xlu1 %1000 }
 0x1eb   : > { %v2136_v29 = vpop.permute.xlu0 %1021 }
 0x1ee   : > { %v2132_v20 = vpop.permute.xlu1 %1005 }
 0x1f3   : > { %v2141_v38 = vpop.permute.xlu1 %1025 }
 0x1f7   : > { %v1030_v53 = vpop.permute.xlu1 %1029 }
 0x286   : > { %v867_v5 = vpop.f32.mrb[4].mxu1 }
 0x287   : > { %v869_v6 = vpop.f32.mrb[5].mxu1 }
 0x288   : > { %v871_v7 = vpop.f32.mrb[6].mxu1 }
 0x289   : > { %v873_v8 = vpop.f32.mrb[7].mxu1 }
 0x28e   : > { %v877_v9 = vpop.f32.mrb[8].mxu1 }
 0x28f   : > { %v879_v10 = vpop.f32.mrb[9].mxu1 }
 0x290   : > { %v881_v11 = vpop.f32.mrb[10].mxu1 }
 0x291   : > { %v883_v12 = vpop.f32.mrb[11].mxu1 }
 0x2a9   : > { %v1553_v14 = vpop.f32.mrb[12].mxu1 }
 0x2aa   : > { %v1554_v16 = vpop.f32.mrb[13].mxu1 }
 0x2ab   : > { %v1555_v17 = vadd.f32 %v1554_v16, %v1553_v14  ;;  %v1556_v18 = vpop.f32.mrb[14].mxu1 }
 0x2ac   : > { %v1557_v19 = vpop.f32.mrb[15].mxu1 }
 0x2ad   : > { %v2134_v22 = vadd.f32 %v1557_v19, %v1556_v18 }
 0x2ae   : > { %v814_v23 = vpop.f32.mrb[8].mxu0 }
 0x2af   : > { %v868_v24 = vadd.f32 %v867_v5, %v814_v23  ;;  %v816_v26 = vpop.f32.mrb[9].mxu0 }
 0x2b0   : > { %v870_v30 = vadd.f32 %v869_v6, %v816_v26  ;;  %v818_v31 = vpop.f32.mrb[10].mxu0 }
 0x2b1   : > { %v1008_v34 = vmul.f32 %v2126_v13, %v868_v24  ;;  %v872_v27 = vadd.f32 %v871_v7, %v818_v31  ;;  %v820_v35 = vpop.f32.mrb[11].mxu0  ;;  %v1559_v36 = vpop.f32.mrb[16].mxu1 }
 0x2b2   : > { %v1009_v25 = vmul.f32 %v2126_v13, %v870_v30  ;;  %v874_v32 = vadd.f32 %v873_v8, %v820_v35  ;;  %v1560_v28 = vpop.f32.mrb[17].mxu1 }
 0x2b3   : > { %v1036_v39 = vadd.f32 %v2136_v29, %v1008_v34  ;;  %v1011_v1 = vmul.f32 %v2130_v15, %v872_v27  ;;  %v1561_v33 = vadd.f32 %v1560_v28, %v1559_v36  ;;  %v1562_v40 = vpop.f32.mrb[18].mxu1 }
 0x2b4   : > { %v1037_v41 = vadd.f32 %v2136_v29, %v1009_v25  ;;  %v1012_v21 = vmul.f32 %v2130_v15, %v874_v32  ;;  %v1563_v42 = vpop.f32.mrb[19].mxu1 }
 0x2b5   : > { %v2149_v43 = vmax.f32 %v1036_v39, 0.0  ;;  %v1039_v37 = vadd.f32 %v2141_v38, %v1011_v1  ;;  %v1564_v44 = vadd.f32 %v1563_v42, %v1562_v40 }
 0x2b6   : > { %v2152_v45 = vmax.f32 %v1037_v41, 0.0  ;;  %v1040_v46 = vadd.f32 %v2141_v38, %v1012_v21  ;;  %v824_v47 = vpop.f32.mrb[12].mxu0 }
 0x2b7   : > { %v2157_v48 = vpack.c.bf16 %v2149_v43, %v2149_v43  ;;  %v2159_v49 = vmax.f32 %v1039_v37, 0.0  ;;  %v878_v50 = vadd.f32 %v877_v9, %v824_v47  ;;  %v826_v51 = vpop.f32.mrb[13].mxu0 }
 0x2b8   : > { %v2163_v52 = vpack.c.bf16 %v2152_v45, %v2152_v45  ;;  %v2165_v55 = vmax.f32 %v1040_v46, 0.0  ;;  %v880_v56 = vadd.f32 %v879_v10, %v826_v51  ;;  %v828_v3 = vpop.f32.mrb[14].mxu0  ;;  %v1515_v58 = vpack.c.bf16 %v2152_v45, %v2149_v43  ;;  %v1034_v10 = vpop.permute.xlu0 %1033 }
 0x2b9   : > { %v2171_v59 = vpack.c.bf16 %v2159_v49, %v2159_v49  ;;  %v1014_v60 = vmul.f32 %v2128_v54, %v878_v50  ;;  %v882_v61 = vadd.f32 %v881_v11, %v828_v3  ;;  %v1585_v62 = vpop.f32.mrb[20].mxu1  ;;  %1085 = vrot.lane.b32.xlu1 %v2157_v48, %s2533_s16  ;;  %v830_v63 = vpop.f32.mrb[15].mxu0  ;;  %1081 = vst.msk [vmem:[%s2176_s19] sm:$0xf] %vm1080_vm11, %v2157_v48 }
 0x2ba   : > { %v1015_v0 = vmul.f32 %v2128_v54, %v880_v56  ;;  %v978_v2 = vadd.f32 %v1585_v62, %v1561_v33  ;;  %v884_v4 = vadd.f32 %v883_v12, %v830_v63  ;;  %v969_v57 = vpop.f32.mrb[21].mxu1  ;;  %1227 = vrot.lane.b32.xlu0 %v2163_v52, %s1764_s20  ;;  %v1516_v9 = vpack.c.bf16 %v2165_v55, %v2159_v49 }
 0x2bb   : > { %v1017_v5 = vmul.f32 %v2132_v20, %v882_v61  ;;  %v1042_v6 = vadd.f32 %v1030_v53, %v1014_v60  ;;  %v970_v7 = vadd.f32 %v1555_v17, %v969_v57  ;;  %v1586_v8 = vpop.f32.mrb[22].mxu1  ;;  %1082 = vst.msk [vmem:[%s2176_s19 + $0x8] sm:$0xf] %vm1080_vm11, %v2171_v59  ;;  %v1520_v42 = vpack.c.bf16 %v2165_v55, %v2165_v55 }
 0x2bc   : > { %v1016_v11 = vmul.f32 %v2128_v54, %v978_v2  ;;  %v1018_v12 = vmul.f32 %v2132_v20, %v884_v4  ;;  %v1043_v14 = vadd.f32 %v1030_v53, %v1015_v0  ;;  %v981_v16 = vadd.f32 %v1586_v8, %v1564_v44  ;;  %v972_v18 = vpop.f32.mrb[23].mxu1 }
 0x2bd   : > { %v1045_v19 = vadd.f32 %v1034_v10, %v1017_v5  ;;  %v2192_v23 = vmax.f32 %v1042_v6, 0.0  ;;  %v1010_v17 = vmul.f32 %v2126_v13, %v970_v7  ;;  %v973_v24 = vadd.f32 %v2134_v22, %v972_v18  ;;  %1102 = vrot.lane.b32.xlu1 %v2157_v48, %s1765_s26 }
 0x2be   : > { %v1046_v26 = vadd.f32 %v1034_v10, %v1018_v12  ;;  %v1044_v30 = vadd.f32 %v1030_v53, %v1016_v11  ;;  %v2198_v31 = vmax.f32 %v1043_v14, 0.0  ;;  %v1019_v54 = vmul.f32 %v2132_v20, %v981_v16  ;;  %1243 = vrot.lane.b32.xlu0 %v2163_v52, %s1760_s17 }
 0x2bf   : > { %v2203_v34 = vmax.f32 %v1045_v19, 0.0  ;;  %v2207_v13 = vpack.c.bf16 %v2192_v23, %v2192_v23  ;;  %v1038_v22 = vadd.f32 %v2136_v29, %v1010_v17  ;;  %v1013_v27 = vmul.f32 %v2130_v15, %v973_v24 }
 0x2c0   : > { %v2211_v35 = vmax.f32 %v1046_v26, 0.0  ;;  %v2213_v36 = vmax.f32 %v1044_v30, 0.0  ;;  %v1517_v20 = vpack.c.bf16 %v2198_v31, %v2192_v23  ;;  %v1047_v28 = vadd.f32 %v1034_v10, %v1019_v54 }
 0x2c1   : > { %v2219_v25 = vpack.c.bf16 %v2203_v34, %v2203_v34  ;;  %v1050_v32 = vmax.f32 %v1038_v22, 0.0  ;;  %v1041_v39 = vadd.f32 %v2141_v38, %v1013_v27  ;;  %1119 = vrot.lane.b32.xlu1 %v2157_v48, %s1766_s28  ;;  %1083 = vst.msk [vmem:[%s2176_s19 + $0x10] sm:$0xf] %vm1080_vm11, %v2207_v13  ;;  %v1521_v37 = vpack.c.bf16 %v2198_v31, %v2198_v31 }
 0x2c2   : > { %v1525_v15 = vpack.c.bf16 %v2213_v36, %v2198_v31  ;;  %1259 = vrot.lane.b32.xlu0 %v2163_v52, %s1761_s18  ;;  %v1518_v29 = vpack.c.bf16 %v2211_v35, %v2203_v34  ;;  %v2233_v1 = vmax.f32 %v1047_v28, 0.0  ;;  %v1522_v44 = vpack.c.bf16 %v2211_v35, %v2211_v35 }
 0x2c3   : > { %v1053_v33 = vmax.f32 %v1041_v39, 0.0  ;;  %v1523_v38 = vpack.c.bf16 %v1050_v32, %v2152_v45  ;;  %1084 = vst.msk [vmem:[%s2176_s19 + $0x18] sm:$0xf] %vm1080_vm11, %v2219_v25  ;;  %v1527_v21 = vpack.c.bf16 %v1050_v32, %v1050_v32  ;;  %v1529_v45 = vpack.c.bf16 %v2213_v36, %v2213_v36 }
 0x2c4   : > { %v1526_v40 = vpack.c.bf16 %v2233_v1, %v2211_v35  ;;  %v1530_v47 = vpack.c.bf16 %v2233_v1, %v2233_v1 }
 0x2c5   : > { %1136 = vrot.lane.b32.xlu1 %v2157_v48, %s1767_s29  ;;  %v1524_v41 = vpack.c.bf16 %v1053_v33, %v2165_v55  ;;  %v1528_v43 = vpack.c.bf16 %v1053_v33, %v1053_v33 }
 0x2c6   : > { %1275 = vrot.lane.b32.xlu0 %v2163_v52, %s1768_s9 }
 0x2c9   : > { %1153 = vrot.lane.b32.xlu1 %v2157_v48, %s1769_s10 }
 0x2ca   : > { %1333 = vrot.lane.b32.xlu0 %v1523_v38, %s1770_s11 }
 0x2cd   : > { %1170 = vrot.lane.b32.xlu1 %v2157_v48, %s2535_s12 }
 0x2ce   : > { %1087 = vrot.lane.b32.xlu0 %v2171_v59, %s2533_s16  ;;  %s2537_s16 = smov 98  }
 0x2d1   : > { %1197 = vrot.lane.b32.xlu1 %v1515_v58, %s1772_s13 }
 0x2d2   : > { %1104 = vrot.lane.b32.xlu0 %v2171_v59, %s1765_s26 }
 0x2d5   : > { %1291 = vrot.lane.b32.xlu1 %v2163_v52, %s1773_s15 }
 0x2d6   : > { %1121 = vrot.lane.b32.xlu0 %v2171_v59, %s1766_s28 }
 0x2d9   : > { %1307 = vrot.lane.b32.xlu1 %v2163_v52, %s1774_s14 }
 0x2da   : > { %1138 = vrot.lane.b32.xlu0 %v2171_v59, %s1767_s29 }
 0x2dd   : > { %1362 = vrot.lane.b32.xlu1 %v1527_v21, %s2537_s16 }
 0x2de   : > { %1155 = vrot.lane.b32.xlu0 %v2171_v59, %s1769_s10 }
 0x2e1   : > { %1229 = vrot.lane.b32.xlu1 %v1520_v42, %s1764_s20 }
 0x2e2   : > { %1172 = vrot.lane.b32.xlu0 %v2171_v59, %s2535_s12  ;;  %s2541_s12 = smov 126  }
 0x2e5   : > { %1245 = vrot.lane.b32.xlu1 %v1520_v42, %s1760_s17 }
 0x2e6   : > { %1199 = vrot.lane.b32.xlu0 %v1516_v9, %s1772_s13 }
 0x2e9   : > { %1261 = vrot.lane.b32.xlu1 %v1520_v42, %s1761_s18 }
 0x2ea   : > { %1293 = vrot.lane.b32.xlu0 %v1520_v42, %s1773_s15 }
 0x2ed   : > { %1277 = vrot.lane.b32.xlu1 %v1520_v42, %s1768_s9 }
 0x2ee   : > { %1309 = vrot.lane.b32.xlu0 %v1520_v42, %s1774_s14 }
 0x2f1   : > { %1335 = vrot.lane.b32.xlu1 %v1524_v41, %s1770_s11 }
 0x2f2   : > { %1364 = vrot.lane.b32.xlu0 %v1528_v43, %s2537_s16  ;;  %s2542_s16 = smov 116  }
 0x2f5   : > { %1089 = vrot.lane.b32.xlu1 %v2207_v13, %s2541_s12 }
 0x2f6   : > { %1231 = vrot.lane.b32.xlu0 %v1521_v37, %s1764_s20 }
 0x2f9   : > { %1106 = vrot.lane.b32.xlu1 %v2207_v13, %s1765_s26 }
 0x2fa   : > { %1247 = vrot.lane.b32.xlu0 %v1521_v37, %s1760_s17 }
 0x2fd   : > { %1123 = vrot.lane.b32.xlu1 %v2207_v13, %s1766_s28 }
 0x2fe   : > { %1263 = vrot.lane.b32.xlu0 %v1521_v37, %s1761_s18 }
 0x301   : > { %1140 = vrot.lane.b32.xlu1 %v2207_v13, %s1767_s29 }
 0x302   : > { %1279 = vrot.lane.b32.xlu0 %v1521_v37, %s1768_s9 }
 0x305   : > { %1157 = vrot.lane.b32.xlu1 %v2207_v13, %s1769_s10 }
 0x306   : > { %1337 = vrot.lane.b32.xlu0 %v1525_v15, %s1770_s11 }
 0x309   : > { %1174 = vrot.lane.b32.xlu1 %v2207_v13, %s2542_s16 }
 0x30a   : > { %1091 = vrot.lane.b32.xlu0 %v2219_v25, %s2541_s12 }
 0x30d   : > { %1201 = vrot.lane.b32.xlu1 %v1517_v20, %s1772_s13 }
 0x30e   : > { %1108 = vrot.lane.b32.xlu0 %v2219_v25, %s1765_s26 }
 0x311   : > { %1295 = vrot.lane.b32.xlu1 %v1521_v37, %s1773_s15 }
 0x312   : > { %1125 = vrot.lane.b32.xlu0 %v2219_v25, %s1766_s28 }
 0x315   : > { %1311 = vrot.lane.b32.xlu1 %v1521_v37, %s1774_s14 }
 0x316   : > { %1142 = vrot.lane.b32.xlu0 %v2219_v25, %s1767_s29 }
 0x319   : > { %1233 = vrot.lane.b32.xlu1 %v1522_v44, %s1764_s20 }
 0x31a   : > { %1159 = vrot.lane.b32.xlu0 %v2219_v25, %s1769_s10 }
 0x31d   : > { %1249 = vrot.lane.b32.xlu1 %v1522_v44, %s1760_s17  ;;  %s1531_s17 = sshll.u32 %s1835_s25, 9  ;;  %s2544_s25 = sand.u32 1, %s1744_s22  }
 0x31e   : > { %1176 = vrot.lane.b32.xlu0 %v2219_v25, %s2542_s16  ;;  %s2543_s16 = smov 98   ;;  %s2472_s26 = scalar_lea.hbm %s2531_s6, %s1531_s17 }
 0x31f   : > { %s2484_s28 = scalar_lea.sflag [#allocation3], %s2544_s25 }
 0x321   : > { %1265 = vrot.lane.b32.xlu1 %v1522_v44, %s1761_s18  ;;  %s1392_s18 = sshll.u32 %s2176_s19, 4  ;;  %s2474_s18 = int_to_ptr.vmem [resolvable:$true] %s1392_s18 }
 0x322   : > { %1203 = vrot.lane.b32.xlu0 %v1518_v29, %s1772_s13  ;;  %s1690_s29 = scalar_lea.vmem %s2474_s18, 512 }
 0x323   : > { %p1691_p11 = scmp.ne.s32.totalorder %s2474_s18, %s1690_s29 }
 0x325   : > { %1281 = vrot.lane.b32.xlu1 %v1522_v44, %s1768_s9  ;;  %p1692_p12 = pnand %p1691_p11, %p1852_p5  ;;  %s1776_s9 = smov [#allocation2]  }
 0x326   : > { %1297 = vrot.lane.b32.xlu0 %v1522_v44, %s1773_s15  ;;  %s1694_s10 = sshll.u32 %s1776_s9, 4  ;;  %s1695_s10 = int_to_ptr.vmem [resolvable:$false] %s1694_s10 }
 0x327   : > { %p1693_p13 = pneg %p1692_p12  ;;  %p1697_p0 = scmp.lt.s32.totalorder %s2474_s18, %s1695_s10 }
 0x329   : > { %1339 = vrot.lane.b32.xlu1 %v1526_v40, %s1770_s11  ;;  %s1696_s11 = scalar_lea.vmem %s1695_s10, 1024 }
 0x32a   : > { %1313 = vrot.lane.b32.xlu0 %v1522_v44, %s1774_s14  ;;  %p1698_p1 = scmp.lt.s32.totalorder %s1696_s11, %s1690_s29 }
 0x32b   : > { %v1086_v46 = vpop.permute.xlu1 %1085 }
 0x32c   : > { %1098 = vst.msk [vmem:[%s2176_s19] sm:$0xf] %vm1097_vm12, %v1086_v46  ;;  %v1228_v48 = vpop.permute.xlu0 %1227  ;;  %p1699_p2 = por %p1698_p1, %p1697_p0 }
 0x32d   : > { %1239 = vst.msk [vmem:[%s2176_s19 + $0x4] sm:$0xf] %vm1080_vm11, %v1228_v48  ;;  %1366 = vrot.lane.b32.xlu1 %v1529_v45, %s2543_s16 }
 0x32e   : > { %1368 = vrot.lane.b32.xlu0 %v1530_v47, %s2543_s16  ;;  %p1700_p3 = pnand %p1699_p2, %p1693_p13 }
 0x32f   : > { %v1103_v49 = vpop.permute.xlu1 %1102 }
 0x330   : > { %1115 = vst.msk [vmem:[%s2176_s19] sm:$0xf] %vm1114_vm13, %v1103_v49  ;;  %v1244_v50 = vpop.permute.xlu0 %1243 }
 0x331   : > { %1255 = vst.msk [vmem:[%s2176_s19 + $0x4] sm:$0xf] %vm1097_vm12, %v1244_v50 }
 0x333   : > { %v1120_v51 = vpop.permute.xlu1 %1119 }
 0x334   : > { %1132 = vst.msk [vmem:[%s2176_s19] sm:$0xf] %vm1131_vm14, %v1120_v51  ;;  %v1260_v52 = vpop.permute.xlu0 %1259 }
 0x335   : > { %1271 = vst.msk [vmem:[%s2176_s19 + $0x4] sm:$0xf] %vm1114_vm13, %v1260_v52 }
 0x337   : > { %v1137_v55 = vpop.permute.xlu1 %1136 }
 0x338   : > { %1149 = vst.msk [vmem:[%s2176_s19] sm:$0xf] %vm1148_vm15, %v1137_v55  ;;  %v1276_v56 = vpop.permute.xlu0 %1275 }
 0x339   : > { %1287 = vst.msk [vmem:[%s2176_s19 + $0x4] sm:$0xf] %vm1131_vm14, %v1276_v56 }
 0x33b   : > { %v1154_v3 = vpop.permute.xlu1 %1153 }
 0x33c   : > { %1166 = vst.msk [vmem:[%s2176_s19] sm:$0xf] %vm1165_vm0, %v1154_v3  ;;  %v1334_v53 = vpop.permute.xlu0 %1333 }
 0x33d   : > { %v1341_v2 = vrot.slane %v1334_v53, 4 }
 0x33f   : > { %v1171_v58 = vpop.permute.xlu1 %1170  ;;  %v1346_v5 = vsel %vm1345_vm4, %v1334_v53, %v1341_v2 }
 0x340   : > { %1183 = vst.msk [vmem:[%s2176_s19] sm:$0xf] %vm1182_vm1, %v1171_v58  ;;  %v1088_v59 = vpop.permute.xlu0 %1087 }
 0x341   : > { %1099 = vst.msk [vmem:[%s2176_s19 + $0x8] sm:$0xf] %vm1097_vm12, %v1088_v59 }
 0x343   : > { %v1198_v60 = vpop.permute.xlu1 %1197 }
 0x344   : > { %v1205_v61 = vrot.slane %v1198_v60, 4  ;;  %v1105_v62 = vpop.permute.xlu0 %1104 }
 0x345   : > { %1116 = vst.msk [vmem:[%s2176_s19 + $0x8] sm:$0xf] %vm1114_vm13, %v1105_v62 }
 0x346   : > { %v1210_v63 = vsel %vm1209_vm2, %v1198_v60, %v1205_v61 }
 0x347   : > { %1219 = vst.msk [vmem:[%s2176_s19] sm:$0xf] %vm1218_vm3, %v1210_v63  ;;  %v1292_v0 = vpop.permute.xlu1 %1291 }
 0x348   : > { %1303 = vst.msk [vmem:[%s2176_s19 + $0x4] sm:$0xf] %vm1148_vm15, %v1292_v0  ;;  %v1122_v4 = vpop.permute.xlu0 %1121 }
 0x349   : > { %1133 = vst.msk [vmem:[%s2176_s19 + $0x8] sm:$0xf] %vm1131_vm14, %v1122_v4 }
 0x34b   : > { %v1308_v57 = vpop.permute.xlu1 %1307 }
 0x34c   : > { %1319 = vst.msk [vmem:[%s2176_s19 + $0x4] sm:$0xf] %vm1165_vm0, %v1308_v57  ;;  %v1139_v6 = vpop.permute.xlu0 %1138 }
 0x34d   : > { %1354 = vst.msk [vmem:[%s2176_s19 + $0x4] sm:$0xf] %vm1182_vm1, %v1346_v5 }
 0x34e   : > { %1150 = vst.msk [vmem:[%s2176_s19 + $0x8] sm:$0xf] %vm1148_vm15, %v1139_v6 }
 0x34f   : > { %v1363_v7 = vpop.permute.xlu1 %1362 }
 0x350   : > { %1374 = vst.msk [vmem:[%s2176_s19 + $0x4] sm:$0xf] %vm1218_vm3, %v1363_v7  ;;  %v1156_v8 = vpop.permute.xlu0 %1155 }
 0x351   : > { %1167 = vst.msk [vmem:[%s2176_s19 + $0x8] sm:$0xf] %vm1165_vm0, %v1156_v8 }
 0x353   : > { %v1230_v9 = vpop.permute.xlu1 %1229 }
 0x354   : > { %1240 = vst.msk [vmem:[%s2176_s19 + $0xc] sm:$0xf] %vm1080_vm11, %v1230_v9  ;;  %v1173_v10 = vpop.permute.xlu0 %1172 }
 0x355   : > { %1184 = vst.msk [vmem:[%s2176_s19 + $0x8] sm:$0xf] %vm1182_vm1, %v1173_v10 }
 0x357   : > { %v1246_v11 = vpop.permute.xlu1 %1245 }
 0x358   : > { %1256 = vst.msk [vmem:[%s2176_s19 + $0xc] sm:$0xf] %vm1097_vm12, %v1246_v11  ;;  %v1200_v12 = vpop.permute.xlu0 %1199 }
 0x359   : > { %v1206_v14 = vrot.slane %v1200_v12, 4 }
 0x35b   : > { %v1211_v16 = vsel %vm1209_vm2, %v1200_v12, %v1206_v14  ;;  %v1262_v18 = vpop.permute.xlu1 %1261 }
 0x35c   : > { %1220 = vst.msk [vmem:[%s2176_s19 + $0x8] sm:$0xf] %vm1218_vm3, %v1211_v16  ;;  %v1294_v19 = vpop.permute.xlu0 %1293 }
 0x35d   : > { %1272 = vst.msk [vmem:[%s2176_s19 + $0xc] sm:$0xf] %vm1114_vm13, %v1262_v18 }
 0x35f   : > { %v1278_v23 = vpop.permute.xlu1 %1277 }
 0x360   : > { %1288 = vst.msk [vmem:[%s2176_s19 + $0xc] sm:$0xf] %vm1131_vm14, %v1278_v23  ;;  %v1310_v17 = vpop.permute.xlu0 %1309 }
 0x361   : > { %1304 = vst.msk [vmem:[%s2176_s19 + $0xc] sm:$0xf] %vm1148_vm15, %v1294_v19 }
 0x362   : > { %1320 = vst.msk [vmem:[%s2176_s19 + $0xc] sm:$0xf] %vm1165_vm0, %v1310_v17 }
 0x363   : > { %v1336_v24 = vpop.permute.xlu1 %1335 }
 0x364   : > { %v1342_v26 = vrot.slane %v1336_v24, 4  ;;  %v1365_v30 = vpop.permute.xlu0 %1364 }
 0x366   : > { %v1347_v31 = vsel %vm1345_vm4, %v1336_v24, %v1342_v26 }
 0x367   : > { %1355 = vst.msk [vmem:[%s2176_s19 + $0xc] sm:$0xf] %vm1182_vm1, %v1347_v31  ;;  %v1090_v54 = vpop.permute.xlu1 %1089 }
 0x368   : > { %1375 = vst.msk [vmem:[%s2176_s19 + $0xc] sm:$0xf] %vm1218_vm3, %v1365_v30  ;;  %v1232_v34 = vpop.permute.xlu0 %1231 }
 0x369   : > { %1100 = vst.msk [vmem:[%s2176_s19 + $0x10] sm:$0xf] %vm1097_vm12, %v1090_v54 }
 0x36a   : > { %1241 = vst.msk [vmem:[%s2176_s19 + $0x14] sm:$0xf] %vm1080_vm11, %v1232_v34 }
 0x36b   : > { %v1107_v13 = vpop.permute.xlu1 %1106 }
 0x36c   : > { %1117 = vst.msk [vmem:[%s2176_s19 + $0x10] sm:$0xf] %vm1114_vm13, %v1107_v13  ;;  %v1248_v22 = vpop.permute.xlu0 %1247 }
 0x36d   : > { %1257 = vst.msk [vmem:[%s2176_s19 + $0x14] sm:$0xf] %vm1097_vm12, %v1248_v22 }
 0x36f   : > { %v1124_v27 = vpop.permute.xlu1 %1123 }
 0x370   : > { %1134 = vst.msk [vmem:[%s2176_s19 + $0x10] sm:$0xf] %vm1131_vm14, %v1124_v27  ;;  %v1264_v35 = vpop.permute.xlu0 %1263 }
 0x371   : > { %1273 = vst.msk [vmem:[%s2176_s19 + $0x14] sm:$0xf] %vm1114_vm13, %v1264_v35 }
 0x373   : > { %v1141_v36 = vpop.permute.xlu1 %1140 }
 0x374   : > { %1151 = vst.msk [vmem:[%s2176_s19 + $0x10] sm:$0xf] %vm1148_vm15, %v1141_v36  ;;  %v1280_v20 = vpop.permute.xlu0 %1279 }
 0x375   : > { %1289 = vst.msk [vmem:[%s2176_s19 + $0x14] sm:$0xf] %vm1131_vm14, %v1280_v20 }
 0x377   : > { %v1158_v25 = vpop.permute.xlu1 %1157 }
 0x378   : > { %1168 = vst.msk [vmem:[%s2176_s19 + $0x10] sm:$0xf] %vm1165_vm0, %v1158_v25  ;;  %v1338_v32 = vpop.permute.xlu0 %1337 }
 0x379   : > { %v1343_v40 = vrot.slane %v1338_v32, 4 }
 0x37b   : > { %v1175_v28 = vpop.permute.xlu1 %1174  ;;  %v1348_v42 = vsel %vm1345_vm4, %v1338_v32, %v1343_v40 }
 0x37c   : > { %1185 = vst.msk [vmem:[%s2176_s19 + $0x10] sm:$0xf] %vm1182_vm1, %v1175_v28  ;;  %v1092_v39 = vpop.permute.xlu0 %1091 }
 0x37d   : > { %1101 = vst.msk [vmem:[%s2176_s19 + $0x18] sm:$0xf] %vm1097_vm12, %v1092_v39 }
 0x37f   : > { %v1202_v15 = vpop.permute.xlu1 %1201 }
 0x380   : > { %v1207_v29 = vrot.slane %v1202_v15, 4  ;;  %v1109_v1 = vpop.permute.xlu0 %1108 }
 0x381   : > { %1118 = vst.msk [vmem:[%s2176_s19 + $0x18] sm:$0xf] %vm1114_vm13, %v1109_v1 }
 0x382   : > { %v1212_v33 = vsel %vm1209_vm2, %v1202_v15, %v1207_v29 }
 0x383   : > { %1221 = vst.msk [vmem:[%s2176_s19 + $0x10] sm:$0xf] %vm1218_vm3, %v1212_v33  ;;  %v1296_v38 = vpop.permute.xlu1 %1295 }
 0x384   : > { %1305 = vst.msk [vmem:[%s2176_s19 + $0x14] sm:$0xf] %vm1148_vm15, %v1296_v38  ;;  %v1126_v41 = vpop.permute.xlu0 %1125 }
 0x385   : > { %1135 = vst.msk [vmem:[%s2176_s19 + $0x18] sm:$0xf] %vm1131_vm14, %v1126_v41 }
 0x387   : > { %v1312_v21 = vpop.permute.xlu1 %1311 }
 0x388   : > { %1321 = vst.msk [vmem:[%s2176_s19 + $0x14] sm:$0xf] %vm1165_vm0, %v1312_v21  ;;  %v1143_v43 = vpop.permute.xlu0 %1142 }
 0x389   : > { %1356 = vst.msk [vmem:[%s2176_s19 + $0x14] sm:$0xf] %vm1182_vm1, %v1348_v42 }
 0x38a   : > { %1152 = vst.msk [vmem:[%s2176_s19 + $0x18] sm:$0xf] %vm1148_vm15, %v1143_v43 }
 0x38b   : > { %v1234_v37 = vpop.permute.xlu1 %1233 }
 0x38c   : > { %1242 = vst.msk [vmem:[%s2176_s19 + $0x1c] sm:$0xf] %vm1080_vm11, %v1234_v37  ;;  %v1160_v44 = vpop.permute.xlu0 %1159 }
 0x38d   : > { %1169 = vst.msk [vmem:[%s2176_s19 + $0x18] sm:$0xf] %vm1165_vm0, %v1160_v44 }
 0x38f   : > { %v1250_v45 = vpop.permute.xlu1 %1249 }
 0x390   : > { %1258 = vst.msk [vmem:[%s2176_s19 + $0x1c] sm:$0xf] %vm1097_vm12, %v1250_v45  ;;  %v1177_v46 = vpop.permute.xlu0 %1176 }
 0x391   : > { %1186 = vst.msk [vmem:[%s2176_s19 + $0x18] sm:$0xf] %vm1182_vm1, %v1177_v46 }
 0x393   : > { %v1266_v47 = vpop.permute.xlu1 %1265 }
 0x394   : > { %1274 = vst.msk [vmem:[%s2176_s19 + $0x1c] sm:$0xf] %vm1114_vm13, %v1266_v47  ;;  %v1204_v48 = vpop.permute.xlu0 %1203 }
 0x395   : > { %v1208_v49 = vrot.slane %v1204_v48, 4 }
 0x397   : > { %v1213_v50 = vsel %vm1209_vm2, %v1204_v48, %v1208_v49  ;;  %v1282_v51 = vpop.permute.xlu1 %1281 }
 0x398   : > { %1222 = vst.msk [vmem:[%s2176_s19 + $0x18] sm:$0xf] %vm1218_vm3, %v1213_v50  ;;  %v1298_v52 = vpop.permute.xlu0 %1297 }
 0x399   : > { %1290 = vst.msk [vmem:[%s2176_s19 + $0x1c] sm:$0xf] %vm1131_vm14, %v1282_v51 }
 0x39a   : > { %1306 = vst.msk [vmem:[%s2176_s19 + $0x1c] sm:$0xf] %vm1148_vm15, %v1298_v52 }
 0x39b   : > { %v1340_v55 = vpop.permute.xlu1 %1339 }
 0x39c   : > { %v1344_v56 = vrot.slane %v1340_v55, 4  ;;  %v1314_v3 = vpop.permute.xlu0 %1313 }
 0x39d   : > { %1322 = vst.msk [vmem:[%s2176_s19 + $0x1c] sm:$0xf] %vm1165_vm0, %v1314_v3 }
 0x39e   : > { %v1349_v53 = vsel %vm1345_vm4, %v1340_v55, %v1344_v56 }
 0x39f   : > { %1357 = vst.msk [vmem:[%s2176_s19 + $0x1c] sm:$0xf] %vm1182_vm1, %v1349_v53  ;;  %v1367_v58 = vpop.permute.xlu1 %1366 }
 0x3a0   : > { %1376 = vst.msk [vmem:[%s2176_s19 + $0x14] sm:$0xf] %vm1218_vm3, %v1367_v58  ;;  %v1369_v59 = vpop.permute.xlu0 %1368 }
 0x3a1   : > { %1377 = vst.msk [vmem:[%s2176_s19 + $0x1c] sm:$0xf] %vm1218_vm3, %v1369_v59 }
 0x3a2   : > { %1703 = shalt.err (!%p1700_p3)
}
 0x3a3   : > { %s1704_s19 = scalar_lea.hbm %s2472_s26, 512  ;;  %s1708_s15 = scalar_lea.hbm %s2531_s6, 1024 }
 0x3a4   : > { %p1705_p4 = scmp.ne.s32.totalorder %s2472_s26, %s1704_s19  ;;  %p1709_p9 = scmp.lt.u32.totalorder %s2472_s26, %s2531_s6 }
 0x3a5   : > { %p1710_p10 = scmp.lt.u32.totalorder %s1708_s15, %s1704_s19  ;;  %p1712_p12 = scmp.lt.u32.totalorder %s1704_s19, %s2472_s26 }
 0x3a6   : > { %p1706_p7 = pnand %p1705_p4, %p1852_p5 }
 0x3a7   : > { %p1711_p11 = por %p1710_p10, %p1709_p9 }
 0x3a8   : > { %p1707_p8 = pneg %p1706_p7 }
 0x3a9   : > { %p1713_p13 = por %p1712_p12, %p1711_p11 }
 0x3ab   : > { %p1714_p0 = pnand %p1713_p13, %p1707_p8 }
 0x3ad   : > { %1717 = shalt.err (!%p1714_p0)
}
 0x3ae   : > { %s1777_s14 = smov 128   ;;  %s1778_s20 = smov 8  }
 0x3af   : > { %1597 = dma.vmem_to_hbm [thread:$0]  (%p1852_p5), %s2474_s18, 512, %s2472_s26, %s2484_s28, %s1777_s14, %s1777_s14, %s1778_s20  }
 0x3b0 PF: > { %p1603_p1 = scmp.ge.s32.totalorder %s1752_s24, 2  ;;  %s1407_s25 = sand.u32 1, %s1740_s21  }
 0x3b1   : > { %s1408_s29 = scalar_lea.sflag [#allocation3], %s1407_s25 }
 0x3b2   : > { %p1600_p2 = pnand %p1603_p1, %p1856_p6 }
 0x3b4   : > { %1735 = dma.done.wait (!%p1600_p2), %s1408_s29, 512  }
 0x3b5   : > { %1737 = vsyncadd (!%p1600_p2), %s1408_s29, 4294966784  ;;  %p16_p3 = scmp.ge.s32.totalorder %s1839_s27, 4   ;;  %s2545_s21 = smov %s1744_s22 }
 0x3b6   : > { %s2546_s22 = smov %s1748_s23  ;;  %s2547_s23 = smov %s1850_s30 }
 0x3b7   : > { %s2548_s24 = smov %s1839_s27  ;;  %18 = sbr.rel (!%p16_p3) target bundleno = 3 (0x3), region = 79 }
 0x3be   :  { %1413 = vsyncpa [#allocation3], 1 }
 0x3bf   :  { %1415 = vsyncpa [#allocation3 + $0x1], 1 }

</bundles_post_ra>
